<compile_context>
chip_gen: v6e
topology: v6e:2x2x1
jax: 0.10.0
libtpu: 0.0.40
codegen_flags: <defaults>
</compile_context>

<pallas_src>
import math

import jax
import jax.numpy as jnp
from jax import lax
from jax.experimental import pallas as pl
from jax.experimental.pallas import tpu as pltpu

# ----------------------------- configuration --------------------------------
HIDDEN_DIM = 128         # transformer.d_model (one full lane group)
NUM_GROUPS = 32          # GroupNorm(32, hidden_dim)
NUM_CLASSES = 10
NUM_QUERIES = 16
MAX_WORD_LEN = 4
NUM_DEC_LAYERS = 3       # transformer.decoder.num_layers
EPS_GN = 1e-5
EPS_INVSIG = 1e-5
LANE = 128               # TPU lane width / packed output width
VMEM_LIMIT = 32 * 1024 * 1024   # explicit scoped-VMEM budget (safe on v5e/v6e/v7x)

assert HIDDEN_DIM % LANE == 0
assert NUM_CLASSES + 4 <= LANE


def _pick_row_tile(n, target=256):
    """Largest multiple-of-8 divisor of n that is <= min(target, n // 2).

    Guarantees >= 2 grid steps when possible (pipelining + v7x megacore
    sharding); falls back to one full block otherwise.
    """
    if n % 8 != 0:
        return n
    cap = min(target, max(8, n // 2))
    cap -= cap % 8
    for t in range(cap, 7, -8):
        if n % t == 0:
            return t
    return n


# ------------------------- Pallas kernel: input_proj -------------------------
def _input_proj_kernel(x_ref, w_ref, aff_ref, gmat_ref, gmat_t_ref, o_ref):
    # x_ref:      (1, Cin, HW)  one batch image, NCHW flattened, bf16
    # w_ref:      (Cout, Cin)   1x1 conv weight, bf16
    # aff_ref:    (Cout, 4)     packed [bias | gamma | beta | 0], f32
    # gmat_ref:   (Cout, G)     one-hot group membership; gmat_t is its transpose
    # o_ref:      (1, Cout, HW) projected + group-normalized features (NCHW)
    cout = w_ref.shape[0]
    hw = x_ref.shape[2]
    g = gmat_ref.shape[1]
    inv_n = 1.0 / float((cout // g) * hw)

    bias = aff_ref[:, 0:1]
    gamma = aff_ref[:, 1:2]
    beta = aff_ref[:, 2:3]

    # 1x1 conv == channel matmul, channel-on-sublane / spatial-on-lane (bf16 MXU).
    y = jnp.dot(w_ref[...], x_ref[0],
                preferred_element_type=jnp.float32) + bias           # (Cout, HW) f32

    # Two-pass GroupNorm (stable): mean first, then centered square-sums.
    ch_sum = jnp.sum(y, axis=1, keepdims=True)                       # (Cout, 1)
    mean_g = jnp.dot(gmat_t_ref[...], ch_sum,
                     preferred_element_type=jnp.float32) * inv_n     # (G, 1)
    mean_c = jnp.dot(gmat_ref[...], mean_g,
                     preferred_element_type=jnp.float32)             # (Cout, 1)
    d = y - mean_c
    ch_sq = jnp.sum(d * d, axis=1, keepdims=True)                    # (Cout, 1)
    var_g = jnp.dot(gmat_t_ref[...], ch_sq,
                    preferred_element_type=jnp.float32) * inv_n      # (G, 1)
    inv_g = lax.rsqrt(var_g + EPS_GN)
    inv_c = jnp.dot(gmat_ref[...], inv_g,
                    preferred_element_type=jnp.float32)              # (Cout, 1)

    # Single fused scale/shift pass -> one full store per step (1 vst port on v5e).
    o_ref[0] = (d * (inv_c * gamma) + beta).astype(o_ref.dtype)


def input_proj_level(x_flat, w, affine, gmat, gmat_t):
    B, Cin, HW = x_flat.shape
    Cout = w.shape[0]
    return pl.pallas_call(
        _input_proj_kernel,
        out_shape=jax.ShapeDtypeStruct((B, Cout, HW), jnp.float32),
        grid=(B,),
        in_specs=[
            pl.BlockSpec((1, Cin, HW), lambda b: (b, 0, 0)),
            pl.BlockSpec((Cout, Cin), lambda b: (0, 0)),
            pl.BlockSpec((Cout, 4), lambda b: (0, 0)),
            pl.BlockSpec((Cout, NUM_GROUPS), lambda b: (0, 0)),
            pl.BlockSpec((NUM_GROUPS, Cout), lambda b: (0, 0)),
        ],
        out_specs=pl.BlockSpec((1, Cout, HW), lambda b: (b, 0, 0)),
        compiler_params=pltpu.CompilerParams(
            dimension_semantics=("parallel",),
            vmem_limit_bytes=VMEM_LIMIT),
    )(x_flat, w, affine, gmat, gmat_t)


# --------------------- Pallas kernel: prediction heads -----------------------
def _head_kernel(hs_ref, ref_ref, w_ref, b_ref, out_ref):
    # hs_ref:  (T, D)        row tile of the flattened decoder states, bf16
    # ref_ref: (T, 2)        reference points (compact), f32
    # w_ref:   (D, 2*LANE+2*D)  [wc_pad | w1 | w2 | w3_pad], bf16
    #                           (w3 columns sit at lanes C..C+3 of their group)
    # b_ref:   (1, 2*LANE+2*D)  matching biases, f32
    # out_ref: (T, LANE)     packed: lanes 0:C logits, lanes C:C+4 sigmoid boxes
    d = hs_ref.shape[1]
    pad = out_ref.shape[1]
    o1, o2, o3, o4 = pad, pad + d, pad + 2 * d, 2 * pad + 2 * d

    h = hs_ref[...]

    # Fused class_embed + bbox MLP layer 1: one (T,D)x(D,PAD+D) bf16 MXU push.
    z = jnp.dot(h, w_ref[:, 0:o2],
                preferred_element_type=jnp.float32) + b_ref[:, 0:o2]
    logits = z[:, 0:pad]                                             # (T, PAD)

    # Remaining bbox MLP layers (ReLU on hidden layers, bf16 MXU operands).
    t = jnp.maximum(z[:, o1:o2], 0.0)
    t = jnp.maximum(
        jnp.dot(t.astype(w_ref.dtype), w_ref[:, o2:o3],
                preferred_element_type=jnp.float32) + b_ref[:, o2:o3], 0.0)
    t = jnp.dot(t.astype(w_ref.dtype), w_ref[:, o3:o4],
                preferred_element_type=jnp.float32) + b_ref[:, o3:o4]  # (T, PAD)

    # inverse_sigmoid(reference) added to the cx / cy lanes (C and C+1).
    r = jnp.clip(ref_ref[...], 0.0, 1.0)
    inv = jnp.log(jnp.maximum(r, EPS_INVSIG) / jnp.maximum(1.0 - r, EPS_INVSIG))
    lane = lax.broadcasted_iota(jnp.int32, (1, pad), 1)
    addend = (jnp.where(lane == NUM_CLASSES, inv[:, 0:1], 0.0)
              + jnp.where(lane == NUM_CLASSES + 1, inv[:, 1:2], 0.0))
    boxes = jax.nn.sigmoid(t + addend)

    # One packed lane-dense output: lanes < C from the class head, rest from the
    # (already correctly placed) box head.  One unmasked full-width store.
    out_ref[...] = jnp.where(lane < NUM_CLASSES, logits, boxes).astype(out_ref.dtype)


def pred_heads(hs_flat, ref_flat, w_slab, b_slab):
    N, D = hs_flat.shape
    WCOL = w_slab.shape[1]
    tq = _pick_row_tile(N)
    return pl.pallas_call(
        _head_kernel,
        out_shape=jax.ShapeDtypeStruct((N, LANE), jnp.float32),
        grid=(N // tq,),
        in_specs=[
            pl.BlockSpec((tq, D), lambda i: (i, 0)),
            pl.BlockSpec((tq, 2), lambda i: (i, 0)),
            pl.BlockSpec((D, WCOL), lambda i: (0, 0)),
            pl.BlockSpec((1, WCOL), lambda i: (0, 0)),
        ],
        out_specs=pl.BlockSpec((tq, LANE), lambda i: (i, 0)),
        compiler_params=pltpu.CompilerParams(
            dimension_semantics=("parallel",),
            vmem_limit_bytes=VMEM_LIMIT),
    )(hs_flat, ref_flat, w_slab, b_slab)


# ------------------------------ parameter init -------------------------------
def init_params(key, backbone_channels, hidden_dim, num_classes,
                num_queries, max_word_len):
    ks = list(jax.random.split(key, 16))
    params = {}

    # group membership matrix for GroupNorm(32, hidden_dim)
    gs = hidden_dim // NUM_GROUPS
    ch = jnp.arange(hidden_dim)
    gmat = (ch[:, None] // gs == jnp.arange(NUM_GROUPS)[None, :]).astype(jnp.float32)
    params["gmat"] = gmat                      # (Cout, G)
    params["gmat_t"] = gmat.T                  # (G, Cout)

    # input_proj: per backbone level a 1x1 conv (xavier_uniform, bias 0) + GN(1, 0)
    params["input_proj"] = []
    for i, cin in enumerate(backbone_channels):
        bound = math.sqrt(6.0 / (cin + hidden_dim))
        w = jax.random.uniform(ks[i], (hidden_dim, cin), jnp.float32, -bound, bound)
        b = jnp.zeros((hidden_dim,), jnp.float32)
        gamma = jnp.ones((hidden_dim,), jnp.float32)
        beta = jnp.zeros((hidden_dim,), jnp.float32)
        affine = jnp.stack(
            [b, gamma, beta, jnp.zeros((hidden_dim,), jnp.float32)], axis=1)  # (Cout, 4)
        params["input_proj"].append({
            "w": w, "w_bf16": w.astype(jnp.bfloat16),
            "b": b, "gamma": gamma, "beta": beta, "affine": affine,
        })

    # class_embed / bbox_embed (shared across decoder levels: with_box_refine=False)
    bias_value = -math.log((1.0 - 0.01) / 0.01)
    bnd = 1.0 / math.sqrt(hidden_dim)
    wc = jax.random.uniform(ks[4], (hidden_dim, num_classes), jnp.float32, -bnd, bnd)
    bc = jnp.full((num_classes,), bias_value, jnp.float32)
    w1 = jax.random.uniform(ks[5], (hidden_dim, hidden_dim), jnp.float32, -bnd, bnd)
    b1 = jax.random.uniform(ks[6], (hidden_dim,), jnp.float32, -bnd, bnd)
    w2 = jax.random.uniform(ks[7], (hidden_dim, hidden_dim), jnp.float32, -bnd, bnd)
    b2 = jax.random.uniform(ks[8], (hidden_dim,), jnp.float32, -bnd, bnd)
    # last bbox layer: weight = 0, bias = [0, 0, -2, -2] (module init)
    w3 = jnp.zeros((hidden_dim, 4), jnp.float32)
    b3 = jnp.array([0.0, 0.0, -2.0, -2.0], jnp.float32)
    params["head_raw"] = dict(wc=wc, bc=bc, w1=w1, b1=b1, w2=w2, b2=b2, w3=w3, b3=b3)

    # packed weight / bias slabs: [class | mlp1 | mlp2 | mlp3] along lanes; class
    # columns at lanes 0..C-1 and box columns at lanes C..C+3 of their 128-lane
    # group so the head kernel can emit ONE packed (N, 128) output.
    c = num_classes
    wc_pad = jnp.zeros((hidden_dim, LANE), jnp.float32).at[:, :c].set(wc)
    w3_pad = jnp.zeros((hidden_dim, LANE), jnp.float32).at[:, c:c + 4].set(w3)
    bc_pad = jnp.zeros((1, LANE), jnp.float32).at[0, :c].set(bc)
    b3_pad = jnp.zeros((1, LANE), jnp.float32).at[0, c:c + 4].set(b3)
    params["head_w"] = jnp.concatenate(
        [wc_pad, w1, w2, w3_pad], axis=1).astype(jnp.bfloat16)         # (D, 512) bf16
    params["head_b"] = jnp.concatenate(
        [bc_pad, b1[None, :], b2[None, :], b3_pad], axis=1)            # (1, 512) f32

    # query embeddings / type ids (feed the external transformer; kept for fidelity)
    params["obj_query"] = jax.random.normal(ks[9], (num_queries - max_word_len, hidden_dim))
    params["query_embed"] = jax.random.normal(ks[10], (num_queries - max_word_len - 1, hidden_dim))
    params["type_id"] = jnp.ones((max_word_len + 1, hidden_dim), jnp.float32)
    return params


# ------------------------------- forward pass --------------------------------
def deformable_tgod_forward(features, hs, init_reference, inter_references, params):
    # features: list of NCHW backbone feature maps
    srcs = []
    for lvl, x in enumerate(features):
        B, Cin, H, W = x.shape
        x_flat = x.reshape(B, Cin, H * W).astype(jnp.bfloat16)       # NCHW, compact
        p = params["input_proj"][lvl]
        y = input_proj_level(x_flat, p["w_bf16"], p["affine"],
                             params["gmat"], params["gmat_t"])
        srcs.append(y.reshape(B, HIDDEN_DIM, H, W))                   # NCHW (torch layout)

    # query_embeds = cat([query_embed.weight, type_id]) (input to the transformer)
    query_embeds = jnp.concatenate([params["query_embed"], params["type_id"]], axis=0)

    # decoder prediction heads: one Pallas call, row-tiled over N = L*B*Q
    L, B, Q, D = hs.shape
    N = L * B * Q
    hs_flat = hs.reshape(N, D).astype(jnp.bfloat16)
    ref_stack = jnp.concatenate([init_reference[None], inter_references[:L - 1]], axis=0)
    # TODO(synk): 4-d references (with_box_refine / two_stage variants) not handled.
    assert ref_stack.shape[-1] == 2
    ref_flat = ref_stack.reshape(N, 2).astype(jnp.float32)

    packed = pred_heads(hs_flat, ref_flat, params["head_w"], params["head_b"])
    outputs_class = packed[:, :NUM_CLASSES].reshape(L, B, Q, NUM_CLASSES)
    outputs_coord = packed[:, NUM_CLASSES:NUM_CLASSES + 4].reshape(L, B, Q, 4)

    out = {"pred_logits": outputs_class[-1], "pred_boxes": outputs_coord[-1]}
    # aux_loss=True, is_contrastive=False
    out["aux_outputs"] = [{"pred_logits": a, "pred_boxes": b}
                          for a, b in zip(outputs_class[:-1], outputs_coord[:-1])]
    out["srcs"] = srcs
    out["query_embeds"] = query_embeds
    return out


# ------------------------- pure-JAX reference (check) ------------------------
def reference_forward(features, hs, init_reference, inter_references, params):
    srcs = []
    for lvl, x in enumerate(features):
        B, Cin, H, W = x.shape
        xf = x.reshape(B, Cin, H * W)
        p = params["input_proj"][lvl]
        y = jnp.einsum("oc,bcp->bop", p["w"], xf) + p["b"][None, :, None]
        Cout = y.shape[1]
        gs = Cout // NUM_GROUPS
        yg = y.reshape(B, NUM_GROUPS, gs, H * W)
        mean = jnp.mean(yg, axis=(2, 3), keepdims=True)
        var = jnp.mean((yg - mean) ** 2, axis=(2, 3), keepdims=True)
        yn = ((yg - mean) / jnp.sqrt(var + EPS_GN)).reshape(B, Cout, H * W)
        yn = yn * p["gamma"][None, :, None] + p["beta"][None, :, None]
        srcs.append(yn.reshape(B, Cout, H, W))

    hr = params["head_raw"]
    L = hs.shape[0]
    logits = jnp.einsum("lbqd,dc->lbqc", hs, hr["wc"]) + hr["bc"]
    t = jax.nn.relu(jnp.einsum("lbqd,de->lbqe", hs, hr["w1"]) + hr["b1"])
    t = jax.nn.relu(jnp.einsum("lbqd,de->lbqe", t, hr["w2"]) + hr["b2"])
    t = jnp.einsum("lbqd,de->lbqe", t, hr["w3"]) + hr["b3"]
    ref = jnp.concatenate([init_reference[None], inter_references[:L - 1]], axis=0)
    rc = jnp.clip(ref, 0.0, 1.0)
    inv = jnp.log(jnp.maximum(rc, EPS_INVSIG) / jnp.maximum(1.0 - rc, EPS_INVSIG))
    xy = jax.nn.sigmoid(t[..., :2] + inv)
    wh = jax.nn.sigmoid(t[..., 2:])
    boxes = jnp.concatenate([xy, wh], axis=-1)
    return srcs, logits, boxes


def _assert_close(a, b, name, atol=2e-2, rtol=2e-2):
    a = jnp.asarray(a)
    b = jnp.asarray(b)
    ok = bool(jnp.allclose(a, b, atol=atol, rtol=rtol))
    assert ok, f"mismatch in {name}: max|diff|={float(jnp.max(jnp.abs(a - b)))}"


# ----------------------------------- main ------------------------------------
if __name__ == "__main__":
    key = jax.random.PRNGKey(0)
    k_f0, k_f1, k_hs, k_r0, k_r1, k_p = jax.random.split(key, 6)

    backbone_channels = [8, 16]
    features = [
        jax.random.normal(k_f0, (2, 8, 16, 16), jnp.float32),   # NCHW level 0
        jax.random.normal(k_f1, (2, 16, 8, 8), jnp.float32),    # NCHW level 1
    ]
    hs = jax.random.normal(k_hs, (NUM_DEC_LAYERS, 2, NUM_QUERIES, HIDDEN_DIM), jnp.float32)
    init_reference = jax.nn.sigmoid(jax.random.normal(k_r0, (2, NUM_QUERIES, 2)))
    inter_references = jax.nn.sigmoid(
        jax.random.normal(k_r1, (NUM_DEC_LAYERS, 2, NUM_QUERIES, 2)))

    params = init_params(k_p, backbone_channels, HIDDEN_DIM,
                         NUM_CLASSES, NUM_QUERIES, MAX_WORD_LEN)

    out = deformable_tgod_forward(features, hs, init_reference, inter_references, params)
    jax.block_until_ready(out)

    # shape / sanity checks
    assert out["pred_logits"].shape == (2, NUM_QUERIES, NUM_CLASSES)
    assert out["pred_boxes"].shape == (2, NUM_QUERIES, 4)
    assert len(out["aux_outputs"]) == NUM_DEC_LAYERS - 1
    assert out["srcs"][0].shape == (2, HIDDEN_DIM, 16, 16)
    assert out["srcs"][1].shape == (2, HIDDEN_DIM, 8, 8)
    assert bool(jnp.all(jnp.isfinite(out["pred_logits"])))
    assert bool(jnp.all(jnp.isfinite(out["pred_boxes"])))
    assert bool(jnp.all((out["pred_boxes"] >= 0.0) & (out["pred_boxes"] <= 1.0)))

    # numerical check against a plain-JAX (f32) reference of the same module math
    ref_srcs, ref_logits, ref_boxes = reference_forward(
        features, hs, init_reference, inter_references, params)
    _assert_close(out["pred_logits"], ref_logits[-1], "pred_logits")
    _assert_close(out["pred_boxes"], ref_boxes[-1], "pred_boxes")
    for lvl in range(len(features)):
        _assert_close(out["srcs"][lvl], ref_srcs[lvl], f"srcs[{lvl}]")
    for i, aux in enumerate(out["aux_outputs"]):
        _assert_close(aux["pred_logits"], ref_logits[i], f"aux_logits[{i}]")
        _assert_close(aux["pred_boxes"], ref_boxes[i], f"aux_boxes[{i}]")

    print("KERNEL_OK")
</pallas_src>

<mosaic_0001>
module attributes {stable_mosaic.version = 11 : i64} {
  func.func @_input_proj_kernel(%arg0: i32, %arg1: memref<1x8x256xbf16, #tpu.memory_space<vmem>>, %arg2: memref<128x8xbf16, #tpu.memory_space<vmem>>, %arg3: memref<128x4xf32, #tpu.memory_space<vmem>>, %arg4: memref<128x32xf32, #tpu.memory_space<vmem>>, %arg5: memref<32x128xf32, #tpu.memory_space<vmem>>, %arg6: memref<1x128x256xf32, #tpu.memory_space<vmem>>) attributes {dimension_semantics = [#tpu.dimension_semantics<parallel>], iteration_bounds = array<i64: 2>, scalar_prefetch = 0 : i64, scratch_operands = 0 : i64, tpu.core_type = #tpu.core_type<tc>, window_params = [{transform_indices = @transform_0, window_bounds = array<i64: 1, 8, 256>}, {pipeline_mode = #tpu.pipeline_mode<synchronous>, transform_indices = @transform_1, window_bounds = array<i64: 128, 8>}, {pipeline_mode = #tpu.pipeline_mode<synchronous>, transform_indices = @transform_2, window_bounds = array<i64: 128, 4>}, {pipeline_mode = #tpu.pipeline_mode<synchronous>, transform_indices = @transform_3, window_bounds = array<i64: 128, 32>}, {pipeline_mode = #tpu.pipeline_mode<synchronous>, transform_indices = @transform_4, window_bounds = array<i64: 32, 128>}, {transform_indices = @transform_5, window_bounds = array<i64: 1, 128, 256>}]} {
    %c0 = arith.constant 0 : index
    %c0_0 = arith.constant 0 : index
    %0 = vector.load %arg3[%c0, %c0_0] : memref<128x4xf32, #tpu.memory_space<vmem>>, vector<128x1xf32>
    %c0_1 = arith.constant 0 : index
    %c1 = arith.constant 1 : index
    %1 = vector.load %arg3[%c0_1, %c1] : memref<128x4xf32, #tpu.memory_space<vmem>>, vector<128x1xf32>
    %c0_2 = arith.constant 0 : index
    %c2 = arith.constant 2 : index
    %2 = vector.load %arg3[%c0_2, %c2] : memref<128x4xf32, #tpu.memory_space<vmem>>, vector<128x1xf32>
    %c0_3 = arith.constant 0 : index
    %c0_4 = arith.constant 0 : index
    %3 = vector.load %arg2[%c0_3, %c0_4] : memref<128x8xbf16, #tpu.memory_space<vmem>>, vector<128x8xbf16>
    %c0_5 = arith.constant 0 : index
    %c0_6 = arith.constant 0 : index
    %c0_7 = arith.constant 0 : index
    %4 = vector.load %arg1[%c0_5, %c0_6, %c0_7] : memref<1x8x256xbf16, #tpu.memory_space<vmem>>, vector<1x8x256xbf16>
    %5 = vector.shape_cast %4 : vector<1x8x256xbf16> to vector<8x256xbf16>
    %cst = arith.constant dense<0.000000e+00> : vector<128x256xf32>
    %6 = tpu.matmul %3, %5, %cst {dimension_numbers = #tpu.dot_dimension_numbers<[1], [0], [0], [1], [0, 0, 1, 1], [], []>} : vector<128x8xbf16>, vector<8x256xbf16>, vector<128x256xf32> -> vector<128x256xf32>
    %7 = vector.broadcast %0 : vector<128x1xf32> to vector<128x256xf32>
    %8 = arith.addf %6, %7 : vector<128x256xf32>
    %cst_8 = arith.constant dense<0.000000e+00> : vector<128xf32>
    %9 = vector.multi_reduction <add>, %8, %cst_8 [1] : vector<128x256xf32> to vector<128xf32>
    %10 = vector.shape_cast %9 : vector<128xf32> to vector<128x1xf32>
    %c0_9 = arith.constant 0 : index
    %c0_10 = arith.constant 0 : index
    %11 = vector.load %arg5[%c0_9, %c0_10] : memref<32x128xf32, #tpu.memory_space<vmem>>, vector<32x128xf32>
    %cst_11 = arith.constant dense<0.000000e+00> : vector<32x1xf32>
    %12 = tpu.matmul %11, %10, %cst_11 {dimension_numbers = #tpu.dot_dimension_numbers<[1], [0], [0], [1], [0, 0, 1, 1], [], []>} : vector<32x128xf32>, vector<128x1xf32>, vector<32x1xf32> -> vector<32x1xf32>
    %cst_12 = arith.constant 9.765625E-4 : f32
    %13 = vector.broadcast %cst_12 : f32 to vector<32x1xf32>
    %14 = arith.mulf %12, %13 : vector<32x1xf32>
    %c0_13 = arith.constant 0 : index
    %c0_14 = arith.constant 0 : index
    %15 = vector.load %arg4[%c0_13, %c0_14] : memref<128x32xf32, #tpu.memory_space<vmem>>, vector<128x32xf32>
    %cst_15 = arith.constant dense<0.000000e+00> : vector<128x1xf32>
    %16 = tpu.matmul %15, %14, %cst_15 {dimension_numbers = #tpu.dot_dimension_numbers<[1], [0], [0], [1], [0, 0, 1, 1], [], []>} : vector<128x32xf32>, vector<32x1xf32>, vector<128x1xf32> -> vector<128x1xf32>
    %17 = vector.broadcast %16 : vector<128x1xf32> to vector<128x256xf32>
    %18 = arith.subf %8, %17 : vector<128x256xf32>
    %19 = arith.mulf %18, %18 : vector<128x256xf32>
    %cst_16 = arith.constant dense<0.000000e+00> : vector<128xf32>
    %20 = vector.multi_reduction <add>, %19, %cst_16 [1] : vector<128x256xf32> to vector<128xf32>
    %21 = vector.shape_cast %20 : vector<128xf32> to vector<128x1xf32>
    %c0_17 = arith.constant 0 : index
    %c0_18 = arith.constant 0 : index
    %22 = vector.load %arg5[%c0_17, %c0_18] : memref<32x128xf32, #tpu.memory_space<vmem>>, vector<32x128xf32>
    %cst_19 = arith.constant dense<0.000000e+00> : vector<32x1xf32>
    %23 = tpu.matmul %22, %21, %cst_19 {dimension_numbers = #tpu.dot_dimension_numbers<[1], [0], [0], [1], [0, 0, 1, 1], [], []>} : vector<32x128xf32>, vector<128x1xf32>, vector<32x1xf32> -> vector<32x1xf32>
    %cst_20 = arith.constant 9.765625E-4 : f32
    %24 = vector.broadcast %cst_20 : f32 to vector<32x1xf32>
    %25 = arith.mulf %23, %24 : vector<32x1xf32>
    %cst_21 = arith.constant 9.99999974E-6 : f32
    %26 = vector.broadcast %cst_21 : f32 to vector<32x1xf32>
    %27 = arith.addf %25, %26 : vector<32x1xf32>
    %28 = math.rsqrt %27 : vector<32x1xf32>
    %c0_22 = arith.constant 0 : index
    %c0_23 = arith.constant 0 : index
    %29 = vector.load %arg4[%c0_22, %c0_23] : memref<128x32xf32, #tpu.memory_space<vmem>>, vector<128x32xf32>
    %cst_24 = arith.constant dense<0.000000e+00> : vector<128x1xf32>
    %30 = tpu.matmul %29, %28, %cst_24 {dimension_numbers = #tpu.dot_dimension_numbers<[1], [0], [0], [1], [0, 0, 1, 1], [], []>} : vector<128x32xf32>, vector<32x1xf32>, vector<128x1xf32> -> vector<128x1xf32>
    %31 = arith.mulf %30, %1 : vector<128x1xf32>
    %32 = vector.broadcast %31 : vector<128x1xf32> to vector<128x256xf32>
    %33 = arith.mulf %18, %32 : vector<128x256xf32>
    %34 = vector.broadcast %2 : vector<128x1xf32> to vector<128x256xf32>
    %35 = arith.addf %33, %34 : vector<128x256xf32>
    %c0_25 = arith.constant 0 : index
    %c0_26 = arith.constant 0 : index
    %c0_27 = arith.constant 0 : index
    %36 = vector.load %arg6[%c0_25, %c0_26, %c0_27] : memref<1x128x256xf32, #tpu.memory_space<vmem>>, vector<1x128x256xf32>
    %37 = vector.shape_cast %36 : vector<1x128x256xf32> to vector<128x256xf32>
    %38 = vector.shape_cast %35 : vector<128x256xf32> to vector<1x128x256xf32>
    tpu.vector_store %arg6[%c0_25, %c0_26, %c0_27], %38 {strides = array<i32>} : memref<1x128x256xf32, #tpu.memory_space<vmem>>, vector<1x128x256xf32>,
    return
  }
  func.func @transform_0(%arg0: i32) -> (i32, i32, i32) {
    %c0_i32 = arith.constant 0 : i32
    %c0_i32_0 = arith.constant 0 : i32
    %c0_i32_1 = arith.constant 0 : i32
    return %arg0, %c0_i32, %c0_i32_0 : i32, i32, i32
  }
  func.func @transform_1(%arg0: i32) -> (i32, i32) {
    %c0_i32 = arith.constant 0 : i32
    %c0_i32_0 = arith.constant 0 : i32
    %c0_i32_1 = arith.constant 0 : i32
    return %c0_i32, %c0_i32_0 : i32, i32
  }
  func.func @transform_2(%arg0: i32) -> (i32, i32) {
    %c0_i32 = arith.constant 0 : i32
    %c0_i32_0 = arith.constant 0 : i32
    %c0_i32_1 = arith.constant 0 : i32
    return %c0_i32, %c0_i32_0 : i32, i32
  }
  func.func @transform_3(%arg0: i32) -> (i32, i32) {
    %c0_i32 = arith.constant 0 : i32
    %c0_i32_0 = arith.constant 0 : i32
    %c0_i32_1 = arith.constant 0 : i32
    return %c0_i32, %c0_i32_0 : i32, i32
  }
  func.func @transform_4(%arg0: i32) -> (i32, i32) {
    %c0_i32 = arith.constant 0 : i32
    %c0_i32_0 = arith.constant 0 : i32
    %c0_i32_1 = arith.constant 0 : i32
    return %c0_i32, %c0_i32_0 : i32, i32
  }
  func.func @transform_5(%arg0: i32) -> (i32, i32, i32) {
    %c0_i32 = arith.constant 0 : i32
    %c0_i32_0 = arith.constant 0 : i32
    %c0_i32_1 = arith.constant 0 : i32
    return %arg0, %c0_i32, %c0_i32_0 : i32, i32, i32
  }
}

</mosaic_0001>

<bundles_post_ra>
// kernel: tpu_custom_call.1
= control target key start
LH: loop header
LB: loop body
LE: loop exit
PB: predicated region body
PF: predicated region fallthrough
CT: control target
= control target key end

     0   :  { %10 = vsyncpa [#allocation3], 0  ;;  %s2995_s0 = inlined_call_operand.vmem [shape: bf16[2,8,256], index: 0, kind: input, shape index: {}]   ;;  %s2996_s1 = inlined_call_operand.vmem [shape: bf16[128,8], index: 1, kind: input, shape index: {}]   ;;  %s2997_s2 = inlined_call_operand.vmem [shape: f32[128,4], index: 2, kind: input, shape index: {}]   ;;  %s2998_s3 = inlined_call_operand.vmem [shape: f32[128,32], index: 3, kind: input, shape index: {}]   ;;  %s2999_s4 = inlined_call_operand.vmem [shape: f32[32,128], index: 4, kind: input, shape index: {}]   ;;  %s3000_s5 = inlined_call_operand.hbm [shape: f32[2,128,256], index: 5, kind: output, shape index: {}]  }
   0x1   :  { %12 = vsyncpa [#allocation3 + $0x1], 0  ;;  %s2155_s18 = smov 0   ;;  %s2157_s19 = smov 0  }
   0x2   :  { %s2159_s20 = smov 0   ;;  %s2161_s21 = smov 0  }
   0x3 LB: > { %s2176_s22 = sadd.s32 4294967295, %s2117_s21   ;;  %s1692_s23 = sadd.s32 4294967294, %s2117_s21   ;;  %s2117_s21 = sphi %s2161_s21, %s3073_s21   ;;  %s2113_s20 = sphi %s2159_s20, %s3072_s20   ;;  %s2109_s19 = sphi %s2157_s19, %s3071_s19   ;;  %s2105_s18 = sphi %s2155_s18, %s3070_s18  }
   0x4   : > { %s2180_s24 = sadd.s32 1, %s2117_s21   ;;  %s135_s25 = sadd.s32 1, %s2113_s20 }
   0x5   : > { %s132_s26 = ssub.s32 %s2117_s21, %s2180_s24  ;;  %p145_p0 = scmp.ne.s32.totalorder %s2113_s20, %s2109_s19 }
   0x6   : > { %p133_p1 = scmp.eq.s32.totalorder %s132_s26, 0  ;;  %p146_p2 = scmp.eq.s32.totalorder %s2176_s22, 1 }
   0x7   : > { %p151_p3 = scmp.ne.s32.totalorder %s2109_s19, %s2105_s18  ;;  %p152_p4 = scmp.eq.s32.totalorder %s1692_s23, 1 }
   0x8   : > { %s2191_s27 = scalar_select %p133_p1, %s2113_s20, %s135_s25  }
   0x9   : > { %p2193_p5 = por %p146_p2, %p145_p0  ;;  %p2197_p6 = por %p152_p4, %p151_p3 }
   0xa   : > { %p1695_p7 = scmp.ge.s32.totalorder %s2117_s21, 1  ;;  %p190_p8 = scmp.lt.s32.totalorder %s2117_s21, 3 }
   0xc   : > { %p191_p9 = pnand %p1695_p7, %p190_p8 }
   0xe   : > { %194 = sbr.rel (%p191_p9) target bundleno = 1786 (0x6fa), region = 40 }
  0x13   : > { %p218_p10 = scmp.lt.s32.totalorder %s2176_s22, 1  ;;  %v3001_v0 = vmov 0   ;;  %vm407_vm0 = vcmask 1043456   ;;  %v2214_v2 = vld [vmem:[%s2997_s2 + $0x68] sm:$0xff]  ;;  %v2220_v5 = vld [vmem:[%s2997_s2 + $0x78] sm:$0xff]  ;;  %v2226_v6 = vld [vmem:[%s2997_s2 + $0x60] sm:$0xff] }
  0x14   : > { %446 = vmatprep.mubr.bf16.mxu0 %v3001_v0  ;;  %2030 = vset.pattern.permute.xlu1 %v3001_v0  ;;  %3029 = vst [vmem:[#allocation5_spill] sm:$0xff] %v2214_v2  ;;  %3030 = vst [vmem:[#allocation6_spill] sm:$0xff] %v2220_v5  ;;  %v2039_v8 = vld [vmem:[%s2996_s1] sm:$0xff]   ;;  %v2234_v9 = vld [vmem:[%s2997_s2 + $0x70] sm:$0xff]  ;;  %vm382_vm1 = vcmask 64512   ;;  %vm684_vm2 = vcmask 261120  }
  0x15   : > { %s219_s30 = scalar_select %p218_p10, %s2176_s22, 1  ;;  %2029 = vset.pattern.permute.xlu0 %v3001_v0  ;;  %324 = vperm.xlu1 %2030, %v2214_v2   ;;  %3031 = vst [vmem:[#allocation7_spill] sm:$0xff] %v2226_v6  ;;  %3032 = vst [vmem:[#allocation8_spill] sm:$0xff] %v2234_v9  ;;  %v2241_v10 = vld [vmem:[%s2997_s2 + $0x50] sm:$0xff]  ;;  %v2247_v11 = vld [vmem:[%s2997_s2 + $0x58] sm:$0xff] }
  0x16   : > { %334 = vperm.xlu0 %2029, %v2220_v5   ;;  %3033 = vst [vmem:[#allocation9_spill] sm:$0xff] %v2247_v11  ;;  %v2255_v12 = vld [vmem:[%s2997_s2 + $0x40] sm:$0xff]  ;;  %v2040_v13 = vld [vmem:[%s2996_s1 + $0x8] sm:$0xff]   ;;  %v2270_v15 = vld [vmem:[%s2997_s2 + $0x30] sm:$0xff]  ;;  %s2120_s23 = smov 127   ;;  %s215_s7 = sand.u32 1, %s2109_s19  }
  0x17   : > { %s1755_s6 = sshll.u32 %s219_s30, 3  ;;  %v2263_v14 = vld [vmem:[%s2997_s2 + $0x48] sm:$0xff]  ;;  %v2276_v16 = vld [vmem:[%s2997_s2 + $0x38] sm:$0xff]  ;;  %v2284_v17 = vld [vmem:[%s2997_s2 + $0x20] sm:$0xff]  ;;  %s1696_s8 = sshll.u32 %s215_s7, 8 }
  0x18   : > { %s222_s9 = scalar_lea.vmem %s2995_s0, %s1755_s6  ;;  %3034 = vst [vmem:[#allocation10_spill] sm:$0xff] %v2263_v14  ;;  %v2041_v18 = vld [vmem:[%s2996_s1 + $0x10] sm:$0xff]   ;;  %v2292_v19 = vld [vmem:[%s2997_s2 + $0x28] sm:$0xff]  ;;  %v2305_v21 = vld [vmem:[%s2997_s2 + $0x18] sm:$0xff]  ;;  %s1756_s10 = sshll.u32 %s2176_s22, 12 }
  0x19   : > { %v256_v1 = vld [vmem:[%s222_s9] sm:$0xff]  ;;  %319 = vperm.xlu1 %2030, %v2226_v6   ;;  %v2299_v20 = vld [vmem:[%s2997_s2 + $0x10] sm:$0xff]  ;;  %v2042_v23 = vld [vmem:[%s2996_s1 + $0x18] sm:$0xff]   ;;  %s2868_s9 = scalar_lea.vmem [#allocation2], %s1696_s8  ;;  %s2945_s14 = scalar_lea.hbm %s3000_s5, %s1756_s10 }
  0x1a   : > { %v1708_v3 = vcombine.high %v256_v1, %v256_v1  ;;  %v1707_v4 = vcombine.low %v256_v1, %v256_v1  ;;  %329 = vperm.xlu0 %2029, %v2234_v9   ;;  %v2313_v22 = vld [vmem:[%s2997_s2] sm:$0xff]  ;;  %v2321_v24 = vld [vmem:[%s2997_s2 + $0x8] sm:$0xff]  ;;  %v2045_v27 = vld [vmem:[%s2996_s1 + $0x30] sm:$0xff]   ;;  %s1630_s11 = sshll.u32 %s2868_s9, 4  ;;  %s2955_s22 = scalar_lea.sflag [#allocation3], %s215_s7  ;;  %s2947_s11 = int_to_ptr.vmem [resolvable:$true] %s1630_s11 }
  0x1b   : > { %v2043_v25 = vld [vmem:[%s2996_s1 + $0x20] sm:$0xff]   ;;  %v2044_v26 = vld [vmem:[%s2996_s1 + $0x28] sm:$0xff]   ;;  %v2046_v28 = vld [vmem:[%s2996_s1 + $0x38] sm:$0xff]   ;;  %s2057_s15 = scalar_lea.vmem %s2947_s11, 4096  ;;  %s2122_s16 = smov [#allocation2]  }
  0x1c   : > { %1709 = vmatprep.subr.msk.bf16.mxu0 %vm407_vm0, %v1708_v3  ;;  %v409_v7 = vsel %vm407_vm0, %v1707_v4, 0  ;;  %p2058_p11 = scmp.ne.s32.totalorder %s2947_s11, %s2057_s15  ;;  %s2061_s17 = sshll.u32 %s2122_s16, 4  ;;  %s2062_s17 = int_to_ptr.vmem [resolvable:$false] %s2061_s17 }
  0x1d   : > { %429 = vmatpush1.bf16.msra.mxu0 %v409_v7  ;;  %309 = vperm.xlu1 %2030, %v2241_v10   ;;  %p2064_p0 = scmp.lt.s32.totalorder %s2947_s11, %s2062_s17 }
  0x1e   : > { %314 = vperm.xlu0 %2029, %v2247_v11   ;;  %p2059_p12 = pnand %p2058_p11, %p2193_p5 }
  0x20   : > { %1710 = vmatmul.mubr.msk.bf16.vlgmr.msra.gmra.mxu0 %vm382_vm1, %v2039_v8  ;;  %p2060_p13 = pneg %p2059_p12 }
  0x21   : > { %456 = vmatprep.mubr.bf16.mxu0 %v3001_v0  ;;  %299 = vperm.xlu1 %2030, %v2255_v12  }
  0x22   : > { %304 = vperm.xlu0 %2029, %v2263_v14  }
  0x25   : > { %289 = vperm.xlu1 %2030, %v2270_v15  }
  0x26   : > { %294 = vperm.xlu0 %2029, %v2276_v16  }
  0x28   : > { %1711 = vmatmul.mubr.msk.bf16.gmra.mxu0 %vm382_vm1, %v2040_v13 }
  0x29   : > { %466 = vmatprep.mubr.bf16.mxu0 %v3001_v0  ;;  %279 = vperm.xlu1 %2030, %v2284_v17  }
  0x2a   : > { %284 = vperm.xlu0 %2029, %v2292_v19  }
  0x2d   : > { %269 = vperm.xlu1 %2030, %v2299_v20  }
  0x2e   : > { %274 = vperm.xlu0 %2029, %v2305_v21  }
  0x30   : > { %1712 = vmatmul.mubr.msk.bf16.gmra.mxu0 %vm382_vm1, %v2041_v18 }
  0x31   : > { %476 = vmatprep.mubr.bf16.mxu0 %v3001_v0  ;;  %259 = vperm.xlu1 %2030, %v2313_v22  }
  0x32   : > { %264 = vperm.xlu0 %2029, %v2321_v24  }
  0x38   : > { %1713 = vmatmul.mubr.msk.bf16.gmra.mxu0 %vm382_vm1, %v2042_v23 }
  0x39   : > { %486 = vmatprep.mubr.bf16.mxu0 %v3001_v0 }
  0x40   : > { %1714 = vmatmul.mubr.msk.bf16.gmra.mxu0 %vm382_vm1, %v2043_v25 }
  0x41   : > { %496 = vmatprep.mubr.bf16.mxu0 %v3001_v0 }
  0x48   : > { %1715 = vmatmul.mubr.msk.bf16.gmra.mxu0 %vm382_vm1, %v2044_v26 }
  0x49   : > { %506 = vmatprep.mubr.bf16.mxu0 %v3001_v0 }
  0x50   : > { %1716 = vmatmul.mubr.msk.bf16.gmra.mxu0 %vm382_vm1, %v2045_v27 }
  0x51   : > { %516 = vmatprep.mubr.bf16.mxu0 %v3001_v0 }
  0x58   : > { %1717 = vmatmul.mubr.msk.bf16.gmra.mxu0 %vm382_vm1, %v2046_v28 }
  0x90   : > { %v325_v56 = vpop.permute.xlu1 %324 }
  0x91   : > { %v335_v48 = vpop.permute.xlu0 %334 }
  0x94   : > { %v320_v61 = vpop.permute.xlu1 %319 }
  0x95   : > { %v330_v52 = vpop.permute.xlu0 %329 }
  0x98   : > { %v310_v8 = vpop.permute.xlu1 %309 }
  0x99   : > { %v315_v57 = vpop.permute.xlu0 %314 }
  0x9d   : > { %v305_v62 = vpop.permute.xlu0 %304 }
  0xa1   : > { %v295_v23 = vpop.permute.xlu0 %294 }
  0xe0   : > { %v2346_v29 = vpop.f32.mrf.mxu0 }
  0xe2   : > { %v2348_v30 = vpop.f32.mrf.mxu0 }
  0xe4   : > { %v2350_v31 = vpop.f32.mrf.mxu0 }
  0xe6   : > { %v2352_v32 = vpop.f32.mrf.mxu0 }
  0xe8   : > { %v2354_v33 = vpop.f32.mrf.mxu0 }
  0xea   : > { %v2356_v34 = vpop.f32.mrf.mxu0 }
  0xec   : > { %v2358_v35 = vpop.f32.mrf.mxu0 }
  0xee   : > { %v2360_v36 = vpop.f32.mrf.mxu0 }
  0xf0   : > { %v2362_v37 = vpop.f32.mrf.mxu0 }
  0xf2   : > { %v2364_v38 = vpop.f32.mrf.mxu0 }
  0xf4   : > { %v472_v39 = vpop.f32.mrf.mxu0 }
  0xf6   : > { %v474_v40 = vpop.f32.mrf.mxu0 }
  0xf8   : > { %v2366_v41 = vpop.f32.mrf.mxu0 }
  0xfa   : > { %v2368_v42 = vpop.f32.mrf.mxu0 }
  0xfc   : > { %v482_v43 = vpop.f32.mrf.mxu0 }
  0xfe   : > { %v484_v44 = vpop.f32.mrf.mxu0 }
 0x100   : > { %v2370_v45 = vpop.f32.mrf.mxu0 }
 0x102   : > { %v490_v46 = vpop.f32.mrf.mxu0 }
 0x104   : > { %v492_v47 = vpop.f32.mrf.mxu0 }
 0x105   : > { %v2394_v0 = vadd.f32 %v492_v47, %v305_v62 }
 0x106   : > { %v494_v49 = vpop.f32.mrf.mxu0 }
 0x108   : > { %v498_v50 = vpop.f32.mrf.mxu0 }
 0x10a   : > { %v500_v51 = vpop.f32.mrf.mxu0 }
 0x10c   : > { %v502_v53 = vpop.f32.mrf.mxu0 }
 0x10d   : > { %v2380_v26 = vadd.f32 %v502_v53, %v315_v57  ;;  %v300_v53 = vpop.permute.xlu1 %299 }
 0x10e   : > { %v504_v54 = vpop.f32.mrf.mxu0 }
 0x10f   : > { %v2376_v13 = vadd.f32 %v504_v54, %v315_v57  ;;  %v2398_v57 = vadd.f32 %v484_v44, %v295_v23 }
 0x110   : > { %v508_v55 = vpop.f32.mrf.mxu0 }
 0x111   : > { %v2408_v47 = vadd.f32 %v508_v55, %v320_v61 }
 0x112   : > { %v510_v58 = vpop.f32.mrf.mxu0 }
 0x114   : > { %v512_v59 = vpop.f32.mrf.mxu0 }
 0x115   : > { %v2396_v5 = vadd.f32 %v512_v59, %v325_v56  ;;  %v2412_v59 = vadd.f32 %v500_v51, %v310_v8 }
 0x116   : > { %v514_v60 = vpop.f32.mrf.mxu0 }
 0x118   : > { %v518_v63 = vpop.f32.mrf.mxu0 }
 0x119   : > { %v2372_v3 = vadd.f32 %v518_v63, %v330_v52  ;;  %v2386_v63 = vadd.f32 %v494_v49, %v305_v62  ;;  %v2400_v49 = vadd.f32 %v510_v58, %v320_v61  ;;  %v290_v62 = vpop.permute.xlu1 %289 }
 0x11a   : > { %v520_v1 = vpop.f32.mrf.mxu0 }
 0x11b   : > { %v2374_v4 = vadd.f32 %v520_v1, %v330_v52  ;;  %v2388_v52 = vadd.f32 %v514_v60, %v325_v56  ;;  %v560_v1 = vadd.f32 %v2376_v13, %v2380_v26  ;;  %v563_v44 = vadd.f32 %v2400_v49, %v2408_v47 }
 0x11c   : > { %v522_v7 = vpop.f32.mrf.mxu0 }
 0x11d   : > { %v569_v18 = vadd.f32 %v2374_v4, %v2372_v3  ;;  %v2382_v27 = vadd.f32 %v522_v7, %v335_v48  ;;  %v566_v60 = vadd.f32 %v2388_v52, %v2396_v5  ;;  %v554_v7 = vadd.f32 %v2386_v63, %v2394_v0 }
 0x11e   : > { %v524_v25 = vpop.f32.mrf.mxu0 }
 0x11f   : > { %v2384_v28 = vadd.f32 %v524_v25, %v335_v48  ;;  %570 = vadd.xlane.f32.xlu1 %v569_v18  ;;  %v285_v48 = vpop.permute.xlu0 %284  ;;  %v2406_v18 = vadd.f32 %v482_v43, %v295_v23  ;;  %v2420_v43 = vadd.f32 %v498_v50, %v310_v8  ;;  %v280_v50 = vpop.permute.xlu1 %279 }
 0x120   : > { %v2410_v56 = vadd.f32 %v474_v40, %v285_v48  ;;  %v2425_v40 = vadd.f32 %v490_v46, %v300_v53  ;;  %v2441_v46 = vadd.f32 %v2368_v42, %v290_v62 }
 0x121   : > { %v572_v54 = vadd.f32 %v2384_v28, %v2382_v27  ;;  %v548_v58 = vadd.f32 %v2398_v57, %v2406_v18  ;;  %v557_v51 = vadd.f32 %v2412_v59, %v2420_v43 }
 0x123   : > { %573 = vadd.xlane.f32.xlu0 %v572_v54  ;;  %561 = vadd.xlane.f32.xlu1 %v560_v1  ;;  %v275_v25 = vpop.permute.xlu0 %274  ;;  %v2418_v54 = vadd.f32 %v472_v39, %v285_v48  ;;  %v2435_v39 = vadd.f32 %v2370_v45, %v300_v53  ;;  %v2451_v45 = vadd.f32 %v2366_v41, %v290_v62 }
 0x124   : > { %v2423_v55 = vadd.f32 %v2360_v36, %v275_v25  ;;  %v2432_v23 = vadd.f32 %v2358_v35, %v275_v25 }
 0x125   : > { %v542_v61 = vadd.f32 %v2410_v56, %v2418_v54  ;;  %v551_v1 = vadd.f32 %v2425_v40, %v2435_v39  ;;  %v545_v42 = vadd.f32 %v2441_v46, %v2451_v45 }
 0x126   : > { %v536_v35 = vadd.f32 %v2423_v55, %v2432_v23 }
 0x127   : > { %567 = vadd.xlane.f32.xlu0 %v566_v60  ;;  %555 = vadd.xlane.f32.xlu1 %v554_v7  ;;  %v265_v8 = vpop.permute.xlu0 %264  ;;  %v270_v60 = vpop.permute.xlu1 %269  ;;  %v2461_v7 = vadd.f32 %v2362_v37, %v280_v50 }
 0x128   : > { %v2438_v36 = vadd.f32 %v2352_v32, %v265_v8  ;;  %v2448_v48 = vadd.f32 %v2350_v31, %v265_v8  ;;  %v2454_v32 = vadd.f32 %v2364_v38, %v280_v50  ;;  %v2464_v31 = vadd.f32 %v2356_v34, %v270_v60 }
 0x129   : > { %v2469_v38 = vadd.f32 %v2354_v33, %v270_v60  ;;  %v575_v33 = vld [vmem:[%s2999_s4] sm:$0xff] }
 0x12a   : > { %v530_v53 = vadd.f32 %v2438_v36, %v2448_v48  ;;  %v539_v41 = vadd.f32 %v2454_v32, %v2461_v7  ;;  %1869 = vmatprep.mubr.f32.mxu1 %v575_v33  ;;  %1939 = vmatprep.mubr.f32.mxu0 %v575_v33  ;;  %v2487_v33 = vld [vmem:[%s2999_s4 + $0x8] sm:$0xff] }
 0x12b   : > { %564 = vadd.xlane.f32.xlu0 %v563_v44  ;;  %549 = vadd.xlane.f32.xlu1 %v548_v58  ;;  %v260_v44 = vpop.permute.xlu1 %259  ;;  %v533_v37 = vadd.f32 %v2464_v31, %v2469_v38 }
 0x12c   : > { %v2472_v58 = vadd.f32 %v2348_v30, %v260_v44  ;;  %v2477_v62 = vadd.f32 %v2346_v29, %v260_v44 }
 0x12e   : > { %v527_v34 = vadd.f32 %v2472_v58, %v2477_v62 }
 0x12f   : > { %558 = vadd.xlane.f32.xlu0 %v557_v51  ;;  %543 = vadd.xlane.f32.xlu1 %v542_v61 }
 0x133   : > { %552 = vadd.xlane.f32.xlu0 %v551_v1  ;;  %537 = vadd.xlane.f32.xlu1 %v536_v35 }
 0x137   : > { %546 = vadd.xlane.f32.xlu0 %v545_v42  ;;  %531 = vadd.xlane.f32.xlu1 %v530_v53 }
 0x13b   : > { %540 = vadd.xlane.f32.xlu0 %v539_v41 }
 0x13f   : > { %534 = vadd.xlane.f32.xlu0 %v533_v37 }
 0x143   : > { %528 = vadd.xlane.f32.xlu0 %v527_v34 }
 0x1a8   : > { %v571_v25 = vpop.xlane.xlu1 %570 }
 0x1ac   : > { %v574_v30 = vpop.xlane.xlu0 %573  ;;  %v562_v51 = vpop.xlane.xlu1 %561 }
 0x1ad   : > { %1837 = vmatprep.subr.mxu1 %v574_v30 }
 0x1ae   : > { %1838 = vmatpush3.msra.mxu1 %v574_v30  ;;  %v2499_v30 = vld [vmem:[%s2999_s4 + $0x18] sm:$0xff] }
 0x1af   : > { %1839 = vmatprep.subr.mxu1 %v571_v25 }
 0x1b0   : > { %1840 = vmatpush3.msra.mxu1 %v571_v25  ;;  %v568_v29 = vpop.xlane.xlu0 %567  ;;  %v556_v61 = vpop.xlane.xlu1 %555  ;;  %v2492_v25 = vld [vmem:[%s2999_s4 + $0x10] sm:$0xff] }
 0x1b1   : > { %1841 = vmatprep.subr.mxu1 %v568_v29 }
 0x1b2   : > { %1842 = vmatpush3.msra.mxu1 %v568_v29 }
 0x1b4   : > { %v565_v50 = vpop.xlane.xlu0 %564  ;;  %v550_v8 = vpop.xlane.xlu1 %549 }
 0x1b5   : > { %1843 = vmatprep.subr.mxu1 %v565_v50 }
 0x1b6   : > { %1844 = vmatpush3.msra.mxu1 %v565_v50 }
 0x1b7   : > { %1845 = vmatprep.subr.mxu1 %v562_v51 }
 0x1b8   : > { %1846 = vmatpush3.msra.mxu1 %v562_v51  ;;  %v559_v1 = vpop.xlane.xlu0 %558  ;;  %v544_v42 = vpop.xlane.xlu1 %543  ;;  %v2505_v51 = vld [vmem:[%s2998_s3] sm:$0xff] }
 0x1b9   : > { %1847 = vmatprep.subr.mxu1 %v559_v1 }
 0x1ba   : > { %1848 = vmatpush3.msra.mxu1 %v559_v1 }
 0x1bb   : > { %1849 = vmatprep.subr.mxu1 %v556_v61 }
 0x1bc   : > { %1850 = vmatpush3.msra.mxu1 %v556_v61  ;;  %v553_v35 = vpop.xlane.xlu0 %552  ;;  %v538_v60 = vpop.xlane.xlu1 %537 }
 0x1bd   : > { %1851 = vmatprep.subr.mxu1 %v553_v35 }
 0x1be   : > { %1852 = vmatpush3.msra.mxu1 %v553_v35 }
 0x1bf   : > { %1853 = vmatprep.subr.mxu1 %v550_v8 }
 0x1c0   : > { %1854 = vmatpush3.msra.mxu1 %v550_v8  ;;  %v547_v53 = vpop.xlane.xlu0 %546  ;;  %v532_v37 = vpop.xlane.xlu1 %531 }
 0x1c1   : > { %1855 = vmatprep.subr.mxu1 %v547_v53 }
 0x1c2   : > { %1856 = vmatpush3.msra.mxu1 %v547_v53 }
 0x1c3   : > { %1857 = vmatprep.subr.mxu1 %v544_v42 }
 0x1c4   : > { %1858 = vmatpush3.msra.mxu1 %v544_v42  ;;  %v541_v41 = vpop.xlane.xlu0 %540 }
 0x1c5   : > { %1859 = vmatprep.subr.mxu1 %v541_v41 }
 0x1c6   : > { %1860 = vmatpush3.msra.mxu1 %v541_v41  ;;  %v2517_v41 = vld [vmem:[%s2998_s3 + $0x10] sm:$0xff] }
 0x1c7   : > { %1861 = vmatprep.subr.mxu1 %v538_v60  ;;  %3036 = vst [vmem:[#allocation12_spill] sm:$0xff] %v2517_v41 }
 0x1c8   : > { %1862 = vmatpush3.msra.mxu1 %v538_v60  ;;  %v535_v44 = vpop.xlane.xlu0 %534  ;;  %v2512_v60 = vld [vmem:[%s2998_s3 + $0x8] sm:$0xff] }
 0x1c9   : > { %1863 = vmatprep.subr.mxu1 %v535_v44  ;;  %3035 = vst [vmem:[#allocation11_spill] sm:$0xff] %v2512_v60 }
 0x1ca   : > { %1864 = vmatpush3.msra.mxu1 %v535_v44  ;;  %v2526_v44 = vld [vmem:[%s2998_s3 + $0x18] sm:$0xff] }
 0x1cb   : > { %1865 = vmatprep.subr.mxu1 %v532_v37  ;;  %3037 = vst [vmem:[#allocation13_spill] sm:$0xff] %v2526_v44 }
 0x1cc   : > { %1866 = vmatpush3.msra.mxu1 %v532_v37  ;;  %v529_v34 = vpop.xlane.xlu0 %528  ;;  %v2531_v37 = vld [vmem:[%s2998_s3 + $0x20] sm:$0xff] }
 0x1cd   : > { %1867 = vmatprep.subr.mxu1 %v529_v34  ;;  %3038 = vst [vmem:[#allocation14_spill] sm:$0xff] %v2531_v37 }
 0x1ce   : > { %1868 = vmatpush3.msra.mxu1 %v529_v34  ;;  %v2540_v34 = vld [vmem:[%s2998_s3 + $0x28] sm:$0xff] }
 0x1cf   : > { %1870 = vmatmul.mubr.f32.vlgmr.msra.gmra.mxu1 %v2487_v33  ;;  %3039 = vst [vmem:[#allocation15_spill] sm:$0xff] %v2540_v34 }
 0x1d0   : > { %1872 = vmatprep.mubr.f32.mxu1 %v2492_v25 }
 0x1d3   : > { %1873 = vmatmul.mubr.f32.gmra.mxu1 %v2499_v30 }
 0x1d4   : > { %1883 = vmatprep.mubr.msk.f32.mxu1 %vm684_vm2, %v2505_v51 }
 0x28f   : > { %v1871_v29 = vpop.f32.mrf.mxu1 }
 0x290   : > { %v665_v42 = vmul.f32 0.0009765625, %v1871_v29  ;;  %v674_v29 = vld [vmem:[%s2998_s3 + $0x30] sm:$0xff] }
 0x291   : > { %v645_v61 = vpop.f32.mrf.mxu1 }
 0x292   : > { %v664_v53 = vmul.f32 0.0009765625, %v645_v61  ;;  %v2551_v61 = vld [vmem:[%s2998_s3 + $0x38] sm:$0xff] }
 0x293   : > { %v1874_v50 = vpop.f32.mrf.mxu1  ;;  %3040 = vst [vmem:[#allocation16_spill] sm:$0xff] %v2551_v61 }
 0x294   : > { %v667_v8 = vmul.f32 0.0009765625, %v1874_v50  ;;  %v2556_v50 = vld [vmem:[%s2998_s3 + $0x40] sm:$0xff] }
 0x295   : > { %v655_v1 = vpop.f32.mrf.mxu1  ;;  %3041 = vst [vmem:[#allocation17_spill] sm:$0xff] %v2556_v50 }
 0x296   : > { %v666_v35 = vmul.f32 0.0009765625, %v655_v1  ;;  %1875 = vmatprep.subr.mxu1 %v667_v8  ;;  %v2570_v1 = vld [vmem:[%s2998_s3 + $0x50] sm:$0xff] }
 0x297   : > { %1876 = vmatpush3.msra.mxu1 %v667_v8  ;;  %v2565_v8 = vld [vmem:[%s2998_s3 + $0x48] sm:$0xff]  ;;  %3043 = vst [vmem:[#allocation19_spill] sm:$0xff] %v2570_v1 }
 0x298   : > { %1877 = vmatprep.subr.mxu1 %v666_v35  ;;  %3042 = vst [vmem:[#allocation18_spill] sm:$0xff] %v2565_v8 }
 0x299   : > { %1878 = vmatpush3.msra.mxu1 %v666_v35  ;;  %v2579_v35 = vld [vmem:[%s2998_s3 + $0x58] sm:$0xff] }
 0x29a   : > { %1879 = vmatprep.subr.mxu1 %v665_v42  ;;  %3044 = vst [vmem:[#allocation20_spill] sm:$0xff] %v2579_v35 }
 0x29b   : > { %1880 = vmatpush3.msra.mxu1 %v665_v42  ;;  %v2584_v42 = vld [vmem:[%s2998_s3 + $0x60] sm:$0xff] }
 0x29c   : > { %1881 = vmatprep.subr.mxu1 %v664_v53  ;;  %3045 = vst [vmem:[#allocation21_spill] sm:$0xff] %v2584_v42 }
 0x29d   : > { %1882 = vmatpush3.msra.mxu1 %v664_v53  ;;  %v2593_v53 = vld [vmem:[%s2998_s3 + $0x68] sm:$0xff] }
 0x29e   : > { %1884 = vmatmul.mubr.msk.f32.vlgmr.msra.gmra.mxu1 %vm684_vm2, %v2512_v60  ;;  %3046 = vst [vmem:[#allocation22_spill] sm:$0xff] %v2593_v53 }
 0x29f   : > { %1886 = vmatprep.mubr.msk.f32.mxu1 %vm684_vm2, %v2517_v41 }
 0x2a2   : > { %1887 = vmatmul.mubr.msk.f32.gmra.mxu1 %vm684_vm2, %v2526_v44 }
 0x2a3   : > { %1889 = vmatprep.mubr.msk.f32.mxu1 %vm684_vm2, %v2531_v37 }
 0x2a6   : > { %1890 = vmatmul.mubr.msk.f32.gmra.mxu1 %vm684_vm2, %v2540_v34  ;;  %v2598_v34 = vld [vmem:[%s2998_s3 + $0x70] sm:$0xff] }
 0x2a7   : > { %1892 = vmatprep.mubr.msk.f32.mxu1 %vm684_vm2, %v674_v29  ;;  %3047 = vst [vmem:[#allocation23_spill] sm:$0xff] %v2598_v34 }
 0x2aa   : > { %1893 = vmatmul.mubr.msk.f32.gmra.mxu1 %vm684_vm2, %v2551_v61 }
 0x2ab   : > { %1895 = vmatprep.mubr.msk.f32.mxu1 %vm684_vm2, %v2556_v50 }
 0x2ae   : > { %1896 = vmatmul.mubr.msk.f32.gmra.mxu1 %vm684_vm2, %v2565_v8 }
 0x2af   : > { %1898 = vmatprep.mubr.msk.f32.mxu1 %vm684_vm2, %v2570_v1 }
 0x2b2   : > { %1899 = vmatmul.mubr.msk.f32.gmra.mxu1 %vm684_vm2, %v2579_v35 }
 0x2b3   : > { %1901 = vmatprep.mubr.msk.f32.mxu1 %vm684_vm2, %v2584_v42  ;;  %v2607_v42 = vld [vmem:[%s2998_s3 + $0x78] sm:$0xff] }
 0x2b4   : > { %3048 = vst [vmem:[#allocation24_spill] sm:$0xff] %v2607_v42 }
 0x2b6   : > { %1902 = vmatmul.mubr.msk.f32.gmra.mxu1 %vm684_vm2, %v2593_v53 }
 0x2b7   : > { %1904 = vmatprep.mubr.msk.f32.mxu1 %vm684_vm2, %v2598_v34 }
 0x2ba   : > { %1905 = vmatmul.mubr.msk.f32.gmra.mxu1 %vm684_vm2, %v2607_v42 }
 0x2bb   : > { %1962 = vmatprep.mubr.msk.f32.mxu1 %vm684_vm2, %v674_v29 }
 0x35e   : > { %v1885_v35 = vpop.f32.mrf.mxu1 }
 0x360   : > { %v799_v1 = vpop.f32.mrf.mxu1 }
 0x362   : > { %v1888_v37 = vpop.f32.mrf.mxu1 }
 0x364   : > { %v809_v8 = vpop.f32.mrf.mxu1 }
 0x366   : > { %v1891_v44 = vpop.f32.mrf.mxu1 }
 0x368   : > { %v819_v50 = vpop.f32.mrf.mxu1 }
 0x36a   : > { %v1894_v53 = vpop.f32.mrf.mxu1 }
 0x36c   : > { %v829_v41 = vpop.f32.mrf.mxu1 }
 0x36e   : > { %v1897_v61 = vpop.f32.mrf.mxu1 }
 0x370   : > { %v839_v34 = vpop.f32.mrf.mxu1 }
 0x372   : > { %v1900_v60 = vpop.f32.mrf.mxu1 }
 0x374   : > { %v849_v2 = vpop.f32.mrf.mxu1 }
 0x376   : > { %v1903_v9 = vpop.f32.mrf.mxu1 }
 0x378   : > { %v859_v11 = vpop.f32.mrf.mxu1 }
 0x37a   : > { %v1906_v6 = vpop.f32.mrf.mxu1 }
 0x37b   : > { %955 = vperm.xlu1 %2030, %v1906_v6  }
 0x37c   : > { %v869_v14 = vpop.f32.mrf.mxu1 }
 0x37d   : > { %950 = vperm.xlu0 %2029, %v869_v14  }
 0x37f   : > { %945 = vperm.xlu1 %2030, %v1903_v9  }
 0x381   : > { %935 = vperm.xlu0 %2029, %v1900_v60  }
 0x383   : > { %940 = vperm.xlu1 %2030, %v859_v11  }
 0x385   : > { %925 = vperm.xlu0 %2029, %v1897_v61  }
 0x387   : > { %930 = vperm.xlu1 %2030, %v849_v2  }
 0x389   : > { %915 = vperm.xlu0 %2029, %v1894_v53  }
 0x38b   : > { %920 = vperm.xlu1 %2030, %v839_v34  }
 0x38d   : > { %905 = vperm.xlu0 %2029, %v1891_v44  }
 0x38f   : > { %910 = vperm.xlu1 %2030, %v829_v41  }
 0x391   : > { %895 = vperm.xlu0 %2029, %v1888_v37  }
 0x393   : > { %900 = vperm.xlu1 %2030, %v819_v50  }
 0x395   : > { %885 = vperm.xlu0 %2029, %v1885_v35  }
 0x397   : > { %890 = vperm.xlu1 %2030, %v809_v8  }
 0x39b   : > { %880 = vperm.xlu1 %2030, %v799_v1  }
 0x3f6   : > { %v956_v29 = vpop.permute.xlu1 %955 }
 0x3f7   : > { %v2613_v42 = vsub.f32 %v2382_v27, %v956_v29  ;;  %v2616_v6 = vsub.f32 %v2384_v28, %v956_v29 }
 0x3f8   : > { %v951_v9 = vpop.permute.xlu0 %950 }
 0x3f9   : > { %v2619_v11 = vsub.f32 %v2372_v3, %v951_v9  ;;  %v2622_v2 = vsub.f32 %v2374_v4, %v951_v9  ;;  %v1020_v14 = vmul.f32 %v2613_v42, %v2613_v42  ;;  %v1021_v60 = vmul.f32 %v2616_v6, %v2616_v6 }
 0x3fa   : > { %v946_v41 = vpop.permute.xlu1 %945 }
 0x3fb   : > { %v2629_v27 = vsub.f32 %v2396_v5, %v946_v41  ;;  %v2632_v28 = vsub.f32 %v2388_v52, %v946_v41  ;;  %v1067_v44 = vadd.f32 %v1021_v60, %v1020_v14  ;;  %v1018_v3 = vmul.f32 %v2619_v11, %v2619_v11 }
 0x3fc   : > { %v936_v37 = vpop.permute.xlu0 %935  ;;  %v1019_v4 = vmul.f32 %v2622_v2, %v2622_v2 }
 0x3fd   : > { %v2639_v34 = vsub.f32 %v2380_v26, %v936_v37  ;;  %v2642_v61 = vsub.f32 %v2376_v13, %v936_v37  ;;  %1068 = vadd.xlane.f32.xlu0 %v1067_v44  ;;  %v1016_v5 = vmul.f32 %v2629_v27, %v2629_v27  ;;  %v1017_v52 = vmul.f32 %v2632_v28, %v2632_v28 }
 0x3fe   : > { %v941_v50 = vpop.permute.xlu1 %940  ;;  %v1064_v8 = vadd.f32 %v1019_v4, %v1018_v3 }
 0x3ff   : > { %v2649_v1 = vsub.f32 %v2408_v47, %v941_v50  ;;  %v2652_v35 = vsub.f32 %v2400_v49, %v941_v50  ;;  %v1061_v26 = vadd.f32 %v1017_v52, %v1016_v5  ;;  %v1012_v13 = vmul.f32 %v2639_v34, %v2639_v34 }
 0x400   : > { %1065 = vadd.xlane.f32.xlu1 %v1064_v8  ;;  %v926_v53 = vpop.permute.xlu0 %925  ;;  %v1013_v29 = vmul.f32 %v2642_v61, %v2642_v61 }
 0x401   : > { %v2659_v9 = vsub.f32 %v2394_v0, %v926_v53  ;;  %v2662_v14 = vsub.f32 %v2386_v63, %v926_v53  ;;  %1062 = vadd.xlane.f32.xlu0 %v1061_v26  ;;  %v1014_v49 = vmul.f32 %v2649_v1, %v2649_v1  ;;  %v1015_v47 = vmul.f32 %v2652_v35, %v2652_v35 }
 0x402   : > { %v931_v60 = vpop.permute.xlu1 %930  ;;  %v1055_v41 = vadd.f32 %v1013_v29, %v1012_v13 }
 0x403   : > { %v2669_v44 = vsub.f32 %v2420_v43, %v931_v60  ;;  %v2672_v3 = vsub.f32 %v2412_v59, %v931_v60  ;;  %v1058_v0 = vadd.f32 %v1015_v47, %v1014_v49  ;;  %v1008_v63 = vmul.f32 %v2659_v9, %v2659_v9 }
 0x404   : > { %1056 = vadd.xlane.f32.xlu1 %v1055_v41  ;;  %v916_v37 = vpop.permute.xlu0 %915  ;;  %v1009_v4 = vmul.f32 %v2662_v14, %v2662_v14 }
 0x405   : > { %v2679_v5 = vsub.f32 %v2406_v18, %v916_v37  ;;  %v2682_v52 = vsub.f32 %v2398_v57, %v916_v37  ;;  %1059 = vadd.xlane.f32.xlu0 %v1058_v0  ;;  %v1010_v59 = vmul.f32 %v2669_v44, %v2669_v44  ;;  %v1011_v43 = vmul.f32 %v2672_v3, %v2672_v3 }
 0x406   : > { %v921_v50 = vpop.permute.xlu1 %920  ;;  %v1049_v8 = vadd.f32 %v1009_v4, %v1008_v63 }
 0x407   : > { %v2689_v26 = vsub.f32 %v2435_v39, %v921_v50  ;;  %v2692_v13 = vsub.f32 %v2425_v40, %v921_v50  ;;  %v1052_v18 = vadd.f32 %v1011_v43, %v1010_v59  ;;  %v1004_v57 = vmul.f32 %v2679_v5, %v2679_v5 }
 0x408   : > { %1050 = vadd.xlane.f32.xlu1 %v1049_v8  ;;  %v906_v53 = vpop.permute.xlu0 %905  ;;  %v1005_v29 = vmul.f32 %v2682_v52, %v2682_v52 }
 0x409   : > { %v2699_v49 = vsub.f32 %v2418_v54, %v906_v53  ;;  %v2702_v47 = vsub.f32 %v2410_v56, %v906_v53  ;;  %1053 = vadd.xlane.f32.xlu0 %v1052_v18  ;;  %v1006_v40 = vmul.f32 %v2689_v26, %v2689_v26  ;;  %v1007_v39 = vmul.f32 %v2692_v13, %v2692_v13 }
 0x40a   : > { %v911_v60 = vpop.permute.xlu1 %910  ;;  %v1043_v41 = vadd.f32 %v1005_v29, %v1004_v57 }
 0x40b   : > { %v2709_v0 = vsub.f32 %v2451_v45, %v911_v60  ;;  %v2712_v63 = vsub.f32 %v2441_v46, %v911_v60  ;;  %v1046_v54 = vadd.f32 %v1007_v39, %v1006_v40  ;;  %v1000_v56 = vmul.f32 %v2699_v49, %v2699_v49 }
 0x40c   : > { %1044 = vadd.xlane.f32.xlu1 %v1043_v41  ;;  %v896_v37 = vpop.permute.xlu0 %895  ;;  %v1001_v4 = vmul.f32 %v2702_v47, %v2702_v47 }
 0x40d   : > { %v2719_v59 = vsub.f32 %v2432_v23, %v896_v37  ;;  %v2722_v43 = vsub.f32 %v2423_v55, %v896_v37  ;;  %1047 = vadd.xlane.f32.xlu0 %v1046_v54  ;;  %v1002_v46 = vmul.f32 %v2709_v0, %v2709_v0  ;;  %v1003_v45 = vmul.f32 %v2712_v63, %v2712_v63 }
 0x40e   : > { %v901_v50 = vpop.permute.xlu1 %900  ;;  %v1037_v8 = vadd.f32 %v1001_v4, %v1000_v56 }
 0x40f   : > { %v2729_v18 = vsub.f32 %v2461_v7, %v901_v50  ;;  %v2732_v57 = vsub.f32 %v2454_v32, %v901_v50  ;;  %v1040_v23 = vadd.f32 %v1003_v45, %v1002_v46  ;;  %v996_v55 = vmul.f32 %v2719_v59, %v2719_v59 }
 0x410   : > { %1038 = vadd.xlane.f32.xlu1 %v1037_v8  ;;  %v886_v53 = vpop.permute.xlu0 %885  ;;  %v997_v29 = vmul.f32 %v2722_v43, %v2722_v43 }
 0x411   : > { %v2739_v40 = vsub.f32 %v2448_v48, %v886_v53  ;;  %v2742_v39 = vsub.f32 %v2438_v36, %v886_v53  ;;  %1041 = vadd.xlane.f32.xlu0 %v1040_v23  ;;  %v998_v32 = vmul.f32 %v2729_v18, %v2729_v18  ;;  %v999_v7 = vmul.f32 %v2732_v57, %v2732_v57 }
 0x412   : > { %v891_v60 = vpop.permute.xlu1 %890  ;;  %v1031_v41 = vadd.f32 %v997_v29, %v996_v55 }
 0x413   : > { %v2749_v54 = vsub.f32 %v2469_v38, %v891_v60  ;;  %v2752_v56 = vsub.f32 %v2464_v31, %v891_v60  ;;  %v1034_v48 = vadd.f32 %v999_v7, %v998_v32  ;;  %v992_v36 = vmul.f32 %v2739_v40, %v2739_v40 }
 0x414   : > { %1032 = vadd.xlane.f32.xlu1 %v1031_v41  ;;  %v993_v37 = vmul.f32 %v2742_v39, %v2742_v39 }
 0x415   : > { %1035 = vadd.xlane.f32.xlu0 %v1034_v48  ;;  %v994_v4 = vmul.f32 %v2749_v54, %v2749_v54  ;;  %v995_v46 = vmul.f32 %v2752_v56, %v2752_v56 }
 0x416   : > { %v881_v38 = vpop.permute.xlu1 %880  ;;  %v1025_v45 = vadd.f32 %v993_v37, %v992_v36 }
 0x417   : > { %v2763_v31 = vsub.f32 %v2477_v62, %v881_v38  ;;  %v2766_v50 = vsub.f32 %v2472_v58, %v881_v38  ;;  %v1028_v8 = vadd.f32 %v995_v46, %v994_v4 }
 0x418   : > { %1026 = vadd.xlane.f32.xlu1 %v1025_v45 }
 0x419   : > { %1029 = vadd.xlane.f32.xlu0 %v1028_v8  ;;  %v990_v23 = vmul.f32 %v2763_v31, %v2763_v31  ;;  %v991_v55 = vmul.f32 %v2766_v50, %v2766_v50 }
 0x41b   : > { %v1022_v53 = vadd.f32 %v991_v55, %v990_v23  ;;  %v2121_v55 = vmov 2  }
 0x41c   : > { %2032 = vset.pattern.permute.xlu1 %v2121_v55  ;;  %2031 = vset.pattern.permute.xlu0 %v2121_v55 }
 0x41d   : > { %1023 = vadd.xlane.f32.xlu0 %v1022_v53  ;;  %v3053_v53 = vld [vmem:[#allocation5_spill] sm:$0xff] }
 0x429   : > { %1312 = vrot.lane.b32.xlu1 %v2313_v22, %s2120_s23 }
 0x42d   : > { %1316 = vrot.lane.b32.xlu1 %v2299_v20, %s2120_s23 }
 0x431   : > { %1318 = vrot.lane.b32.xlu1 %v2305_v21, %s2120_s23 }
 0x433   : > { %1314 = vrot.lane.b32.xlu0 %v2321_v24, %s2120_s23 }
 0x435   : > { %1322 = vrot.lane.b32.xlu1 %v2292_v19, %s2120_s23 }
 0x437   : > { %1320 = vrot.lane.b32.xlu0 %v2284_v17, %s2120_s23 }
 0x439   : > { %1326 = vrot.lane.b32.xlu1 %v2276_v16, %s2120_s23 }
 0x43b   : > { %1324 = vrot.lane.b32.xlu0 %v2270_v15, %s2120_s23 }
 0x43f   : > { %1328 = vrot.lane.b32.xlu0 %v2255_v12, %s2120_s23 }
 0x443   : > { %1332 = vrot.lane.b32.xlu0 %v2241_v10, %s2120_s23 }
 0x486   : > { %v1069_v29 = vpop.xlane.xlu0 %1068 }
 0x487   : > { %1907 = vmatprep.subr.mxu0 %v1069_v29 }
 0x488   : > { %1908 = vmatpush3.msra.mxu0 %v1069_v29  ;;  %v3054_v29 = vld [vmem:[#allocation6_spill] sm:$0xff] }
 0x489   : > { %v1066_v32 = vpop.xlane.xlu1 %1065 }
 0x48a   : > { %1909 = vmatprep.subr.mxu0 %v1066_v32  ;;  %v1063_v62 = vpop.xlane.xlu0 %1062 }
 0x48b   : > { %1910 = vmatpush3.msra.mxu0 %v1066_v32 }
 0x48c   : > { %1911 = vmatprep.subr.mxu0 %v1063_v62 }
 0x48d   : > { %v1057_v58 = vpop.xlane.xlu1 %1056  ;;  %1912 = vmatpush3.msra.mxu0 %v1063_v62 }
 0x48e   : > { %v1060_v7 = vpop.xlane.xlu0 %1059 }
 0x48f   : > { %1913 = vmatprep.subr.mxu0 %v1060_v7 }
 0x490   : > { %1914 = vmatpush3.msra.mxu0 %v1060_v7 }
 0x491   : > { %v1051_v60 = vpop.xlane.xlu1 %1050  ;;  %1915 = vmatprep.subr.mxu0 %v1057_v58 }
 0x492   : > { %1916 = vmatpush3.msra.mxu0 %v1057_v58  ;;  %v1054_v41 = vpop.xlane.xlu0 %1053 }
 0x493   : > { %1917 = vmatprep.subr.mxu0 %v1054_v41 }
 0x494   : > { %1918 = vmatpush3.msra.mxu0 %v1054_v41 }
 0x495   : > { %v1045_v48 = vpop.xlane.xlu1 %1044  ;;  %1919 = vmatprep.subr.mxu0 %v1051_v60 }
 0x496   : > { %1920 = vmatpush3.msra.mxu0 %v1051_v60  ;;  %v1048_v36 = vpop.xlane.xlu0 %1047 }
 0x497   : > { %1921 = vmatprep.subr.mxu0 %v1048_v36 }
 0x498   : > { %1922 = vmatpush3.msra.mxu0 %v1048_v36  ;;  %v3056_v36 = vld [vmem:[#allocation11_spill] sm:$0xff] }
 0x499   : > { %v1039_v37 = vpop.xlane.xlu1 %1038  ;;  %1923 = vmatprep.subr.mxu0 %v1045_v48 }
 0x49a   : > { %1924 = vmatpush3.msra.mxu0 %v1045_v48  ;;  %v1042_v4 = vpop.xlane.xlu0 %1041 }
 0x49b   : > { %1925 = vmatprep.subr.mxu0 %v1042_v4 }
 0x49c   : > { %1926 = vmatpush3.msra.mxu0 %v1042_v4  ;;  %v3058_v4 = vld [vmem:[#allocation12_spill] sm:$0xff] }
 0x49d   : > { %1927 = vmatprep.subr.mxu0 %v1039_v37  ;;  %v1033_v46 = vpop.xlane.xlu1 %1032 }
 0x49e   : > { %1928 = vmatpush3.msra.mxu0 %v1039_v37  ;;  %v1036_v38 = vpop.xlane.xlu0 %1035  ;;  %v3057_v37 = vld [vmem:[#allocation16_spill] sm:$0xff] }
 0x49f   : > { %1929 = vmatprep.subr.mxu0 %v1036_v38 }
 0x4a0   : > { %1930 = vmatpush3.msra.mxu0 %v1036_v38  ;;  %v3060_v38 = vld [vmem:[#allocation13_spill] sm:$0xff] }
 0x4a1   : > { %1931 = vmatprep.subr.mxu0 %v1033_v46  ;;  %v1027_v8 = vpop.xlane.xlu1 %1026 }
 0x4a2   : > { %1932 = vmatpush3.msra.mxu0 %v1033_v46  ;;  %v1030_v45 = vpop.xlane.xlu0 %1029  ;;  %v3059_v46 = vld [vmem:[#allocation17_spill] sm:$0xff] }
 0x4a3   : > { %1933 = vmatprep.subr.mxu0 %v1030_v45 }
 0x4a4   : > { %1934 = vmatpush3.msra.mxu0 %v1030_v45  ;;  %v3061_v45 = vld [vmem:[#allocation18_spill] sm:$0xff] }
 0x4a5   : > { %1935 = vmatprep.subr.mxu0 %v1027_v8 }
 0x4a6   : > { %1936 = vmatpush3.msra.mxu0 %v1027_v8  ;;  %v1024_v23 = vpop.xlane.xlu0 %1023  ;;  %v3062_v8 = vld [vmem:[#allocation14_spill] sm:$0xff] }
 0x4a7   : > { %1937 = vmatprep.subr.mxu0 %v1024_v23 }
 0x4a8   : > { %1938 = vmatpush3.msra.mxu0 %v1024_v23  ;;  %v3063_v23 = vld [vmem:[#allocation19_spill] sm:$0xff] }
 0x4a9   : > { %1940 = vmatmul.mubr.f32.vlgmr.msra.gmra.mxu0 %v2487_v33  ;;  %v3049_v33 = vld [vmem:[#allocation10_spill] sm:$0xff] }
 0x4aa   : > { %1942 = vmatprep.mubr.f32.mxu0 %v2492_v25  ;;  %1330 = vrot.lane.b32.xlu1 %v3049_v33, %s2120_s23  ;;  %v3050_v25 = vld [vmem:[#allocation7_spill] sm:$0xff] }
 0x4ab   : > { %1336 = vrot.lane.b32.xlu0 %v3050_v25, %s2120_s23 }
 0x4ad   : > { %1943 = vmatmul.mubr.f32.gmra.mxu0 %v2499_v30  ;;  %v3051_v30 = vld [vmem:[#allocation9_spill] sm:$0xff] }
 0x4ae   : > { %1953 = vmatprep.mubr.msk.f32.mxu0 %vm684_vm2, %v2505_v51  ;;  %1334 = vrot.lane.b32.xlu1 %v3051_v30, %s2120_s23  ;;  %v3052_v51 = vld [vmem:[#allocation8_spill] sm:$0xff] }
 0x4af   : > { %1340 = vrot.lane.b32.xlu0 %v3052_v51, %s2120_s23  ;;  %v3067_v51 = vld [vmem:[#allocation22_spill] sm:$0xff] }
 0x4b2   : > { %1338 = vrot.lane.b32.xlu1 %v3053_v53, %s2120_s23 }
 0x4b3   : > { %1489 = vperm.xlu0 %2031, %v2313_v22  }
 0x4b6   : > { %1342 = vrot.lane.b32.xlu1 %v3054_v29, %s2120_s23  ;;  %v3069_v29 = vld [vmem:[#allocation24_spill] sm:$0xff]  ;;  %s2063_s23 = scalar_lea.vmem %s2062_s17, 8192 }
 0x4b7   : > { %1501 = vperm.xlu0 %2031, %v2305_v21   ;;  %v3055_v21 = vmov 0   ;;  %p2065_p1 = scmp.lt.s32.totalorder %s2063_s23, %s2057_s15 }
 0x4b9   : > { %p2066_p2 = por %p2065_p1, %p2064_p0 }
 0x4ba   : > { %1493 = vperm.xlu1 %2032, %v2321_v24  }
 0x4bb   : > { %1509 = vperm.xlu0 %2031, %v2292_v19   ;;  %p2067_p3 = pnand %p2066_p2, %p2060_p13 }
 0x4be   : > { %1497 = vperm.xlu1 %2032, %v2299_v20  }
 0x4bf   : > { %1517 = vperm.xlu0 %2031, %v2276_v16  }
 0x4c2   : > { %1505 = vperm.xlu1 %2032, %v2284_v17  }
 0x4c3   : > { %1525 = vperm.xlu0 %2031, %v3049_v33   ;;  %v3064_v33 = vld [vmem:[#allocation15_spill] sm:$0xff] }
 0x4c6   : > { %1513 = vperm.xlu1 %2032, %v2270_v15  }
 0x4c7   : > { %1533 = vperm.xlu0 %2031, %v3051_v30   ;;  %v3066_v30 = vld [vmem:[#allocation21_spill] sm:$0xff] }
 0x4ca   : > { %1521 = vperm.xlu1 %2032, %v2255_v12  }
 0x4cb   : > { %1541 = vperm.xlu0 %2031, %v3053_v53   ;;  %v3068_v53 = vld [vmem:[#allocation23_spill] sm:$0xff] }
 0x4ce   : > { %1529 = vperm.xlu1 %2032, %v2241_v10  }
 0x4cf   : > { %2034 = vset.pattern.permute.xlu0 %v3055_v21 }
 0x4d2   : > { %1537 = vperm.xlu1 %2032, %v3050_v25   ;;  %v3065_v25 = vld [vmem:[#allocation20_spill] sm:$0xff] }
 0x4d6   : > { %2033 = vset.pattern.permute.xlu1 %v3055_v21  ;;  %v1313_v21 = vpop.permute.xlu1 %1312 }
 0x569   : > { %v1941_v16 = vpop.f32.mrf.mxu0 }
 0x56a   : > { %v1156_v20 = vmul.f32 0.0009765625, %v1941_v16  ;;  %v1317_v16 = vpop.permute.xlu1 %1316 }
 0x56b   : > { %v1136_v17 = vpop.f32.mrf.mxu0 }
 0x56c   : > { %v1155_v24 = vmul.f32 0.0009765625, %v1136_v17  ;;  %v1160_v12 = vadd.f32 1e-05, %v1156_v20 }
 0x56d   : > { %v1944_v19 = vpop.f32.mrf.mxu0 }
 0x56e   : > { %v1158_v22 = vmul.f32 0.0009765625, %v1944_v19  ;;  %v1159_v7 = vadd.f32 1e-05, %v1155_v24  ;;  %v1319_v17 = vpop.permute.xlu1 %1318  ;;  %v1315_v19 = vpop.permute.xlu0 %1314 }
 0x56f   : > { %v1146_v15 = vpop.f32.mrf.mxu0 }
 0x570   : > { %v1162_v32 = vadd.f32 1e-05, %v1158_v22  ;;  %v1157_v62 = vmul.f32 0.0009765625, %v1146_v15 }
 0x572   : > { %2047 = vrsqrt.f32 %v1162_v32  ;;  %v1161_v58 = vadd.f32 1e-05, %v1157_v62  ;;  %v1323_v20 = vpop.permute.xlu1 %1322  ;;  %v1321_v22 = vpop.permute.xlu0 %1320 }
 0x574   : > { %2049 = vrsqrt.f32 %v1161_v58 }
 0x575   : > { %2051 = vrsqrt.f32 %v1160_v12 }
 0x576   : > { %2053 = vrsqrt.f32 %v1159_v7  ;;  %v1327_v15 = vpop.permute.xlu1 %1326 }
 0x57f   : > { %v2048_v10 = vpop.eup %2047 }
 0x580   : > { %1945 = vmatprep.subr.mxu0 %v2048_v10  ;;  %1977 = vmatprep.subr.mxu1 %v2048_v10 }
 0x581   : > { %v2050_v60 = vpop.eup %2049  ;;  %1946 = vmatpush3.msra.mxu0 %v2048_v10  ;;  %1981 = vmatpush3.msra.mxu1 %v2048_v10 }
 0x582   : > { %1947 = vmatprep.subr.mxu0 %v2050_v60  ;;  %1978 = vmatprep.subr.mxu1 %v2050_v60  ;;  %v2052_v41 = vpop.eup %2051 }
 0x583   : > { %1948 = vmatpush3.msra.mxu0 %v2050_v60  ;;  %1982 = vmatpush3.msra.mxu1 %v2050_v60  ;;  %v2054_v48 = vpop.eup %2053  ;;  %v1325_v60 = vpop.permute.xlu0 %1324 }
 0x584   : > { %1949 = vmatprep.subr.mxu0 %v2052_v41  ;;  %1979 = vmatprep.subr.mxu1 %v2052_v41 }
 0x585   : > { %1950 = vmatpush3.msra.mxu0 %v2052_v41  ;;  %1983 = vmatpush3.msra.mxu1 %v2052_v41 }
 0x586   : > { %1951 = vmatprep.subr.mxu0 %v2054_v48  ;;  %1980 = vmatprep.subr.mxu1 %v2054_v48 }
 0x587   : > { %1952 = vmatpush3.msra.mxu0 %v2054_v48  ;;  %1984 = vmatpush3.msra.mxu1 %v2054_v48 }
 0x588   : > { %1954 = vmatmul.mubr.msk.f32.vlgmr.msra.gmra.mxu0 %vm684_vm2, %v3056_v36  ;;  %1963 = vmatmul.mubr.msk.f32.vlgmr.msra.gmra.mxu1 %vm684_vm2, %v3057_v37 }
 0x589   : > { %1956 = vmatprep.mubr.msk.f32.mxu0 %vm684_vm2, %v3058_v4  ;;  %1965 = vmatprep.mubr.msk.f32.mxu1 %vm684_vm2, %v3059_v46  ;;  %v1331_v4 = vpop.permute.xlu1 %1330 }
 0x58c   : > { %1957 = vmatmul.mubr.msk.f32.gmra.mxu0 %vm684_vm2, %v3060_v38  ;;  %1966 = vmatmul.mubr.msk.f32.gmra.mxu1 %vm684_vm2, %v3061_v45 }
 0x58d   : > { %1959 = vmatprep.mubr.msk.f32.mxu0 %vm684_vm2, %v3062_v8  ;;  %1968 = vmatprep.mubr.msk.f32.mxu1 %vm684_vm2, %v3063_v23 }
 0x590   : > { %1960 = vmatmul.mubr.msk.f32.gmra.mxu0 %vm684_vm2, %v3064_v33  ;;  %1969 = vmatmul.mubr.msk.f32.gmra.mxu1 %vm684_vm2, %v3065_v25  ;;  %v1329_v33 = vpop.permute.xlu0 %1328  ;;  %v1335_v25 = vpop.permute.xlu1 %1334 }
 0x591   : > { %1971 = vmatprep.mubr.msk.f32.mxu1 %vm684_vm2, %v3066_v30 }
 0x594   : > { %1972 = vmatmul.mubr.msk.f32.gmra.mxu1 %vm684_vm2, %v3067_v51 }
 0x595   : > { %1974 = vmatprep.mubr.msk.f32.mxu1 %vm684_vm2, %v3068_v53 }
 0x598   : > { %1975 = vmatmul.mubr.msk.f32.gmra.mxu1 %vm684_vm2, %v3069_v29  ;;  %v1333_v29 = vpop.permute.xlu0 %1332 }
 0x648   : > { %v1955_v24 = vpop.f32.mrf.mxu0  ;;  %v1964_v32 = vpop.f32.mrf.mxu1 }
 0x649   : > { %v1361_v62 = vmul.f32 %v1955_v24, %v1315_v19  ;;  %v1367_v10 = vmul.f32 %v1964_v32, %v1327_v15  ;;  %v1339_v24 = vpop.permute.xlu1 %1338 }
 0x64a   : > { %v1233_v12 = vpop.f32.mrf.mxu0  ;;  %v1263_v58 = vpop.f32.mrf.mxu1 }
 0x64b   : > { %v1360_v7 = vmul.f32 %v1313_v21, %v1233_v12  ;;  %1383 = vperm.xlu1 %2033, %v1361_v62   ;;  %v1366_v37 = vmul.f32 %v1325_v60, %v1263_v58 }
 0x64c   : > { %v1958_v41 = vpop.f32.mrf.mxu0  ;;  %v1967_v48 = vpop.f32.mrf.mxu1 }
 0x64d   : > { %1378 = vperm.xlu0 %2034, %v1360_v7   ;;  %v1363_v45 = vmul.f32 %v1958_v41, %v1319_v17  ;;  %v1369_v23 = vmul.f32 %v1967_v48, %v1331_v4  ;;  %v1343_v7 = vpop.permute.xlu1 %1342 }
 0x64e   : > { %v1273_v36 = vpop.f32.mrf.mxu1  ;;  %v1243_v46 = vpop.f32.mrf.mxu0 }
 0x64f   : > { %1413 = vperm.xlu1 %2033, %v1367_v10   ;;  %v1362_v8 = vmul.f32 %v1317_v16, %v1243_v46  ;;  %v1368_v53 = vmul.f32 %v1329_v33, %v1273_v36  ;;  %v1337_v16 = vpop.permute.xlu0 %1336 }
 0x650   : > { %v1970_v38 = vpop.f32.mrf.mxu1  ;;  %v1961_v30 = vpop.f32.mrf.mxu0 }
 0x651   : > { %1408 = vperm.xlu0 %2034, %v1366_v37   ;;  %v1365_v15 = vmul.f32 %v1961_v30, %v1323_v20  ;;  %v1371_v17 = vmul.f32 %v1970_v38, %v1335_v25  ;;  %v2056_v37 = vld [vmem:[%s2997_s2 + $0x78] sm:$0xff]  ;;  %v1494_v4 = vpop.permute.xlu1 %1493 }
 0x652   : > { %v1283_v51 = vpop.f32.mrf.mxu1  ;;  %v1253_v21 = vpop.f32.mrf.mxu0 }
 0x653   : > { %1393 = vperm.xlu1 %2033, %v1363_v45   ;;  %v1364_v32 = vmul.f32 %v1321_v22, %v1253_v21  ;;  %v1370_v12 = vmul.f32 %v1333_v29, %v1283_v51  ;;  %v1341_v36 = vpop.permute.xlu0 %1340  ;;  %v2055_v22 = vld [vmem:[%s2997_s2 + $0x70] sm:$0xff] }
 0x654   : > { %v1973_v19 = vpop.f32.mrf.mxu1 }
 0x655   : > { %1388 = vperm.xlu0 %2034, %v1362_v8   ;;  %v1373_v58 = vmul.f32 %v1973_v19, %v1339_v24  ;;  %v1498_v38 = vpop.permute.xlu1 %1497 }
 0x656   : > { %v1293_v62 = vpop.f32.mrf.mxu1 }
 0x657   : > { %1423 = vperm.xlu1 %2033, %v1369_v23   ;;  %v1372_v60 = vmul.f32 %v1337_v16, %v1293_v62  ;;  %v1490_v46 = vpop.permute.xlu0 %1489 }
 0x658   : > { %v1976_v10 = vpop.f32.mrf.mxu1 }
 0x659   : > { %1418 = vperm.xlu0 %2034, %v1368_v53   ;;  %v1375_v41 = vmul.f32 %v1976_v10, %v1343_v7  ;;  %v2847_v8 = vpop.permute.xlu1 %1505 }
 0x65a   : > { %v1303_v48 = vpop.f32.mrf.mxu1 }
 0x65b   : > { %1403 = vperm.xlu1 %2033, %v1365_v15   ;;  %v1374_v20 = vmul.f32 %v1341_v36, %v1303_v48  ;;  %v1502_v45 = vpop.permute.xlu0 %1501 }
 0x65d   : > { %1398 = vperm.xlu0 %2034, %v1364_v32   ;;  %v1514_v33 = vpop.permute.xlu1 %1513 }
 0x65f   : > { %1433 = vperm.xlu1 %2033, %v1371_v17   ;;  %v2849_v23 = vpop.permute.xlu0 %1509 }
 0x661   : > { %1428 = vperm.xlu0 %2034, %v1370_v12   ;;  %v2851_v30 = vpop.permute.xlu1 %1521 }
 0x663   : > { %1443 = vperm.xlu1 %2033, %v1373_v58   ;;  %v1518_v25 = vpop.permute.xlu0 %1517 }
 0x665   : > { %1438 = vperm.xlu0 %2034, %v1372_v60   ;;  %v2853_v51 = vpop.permute.xlu1 %1529 }
 0x667   : > { %1453 = vperm.xlu1 %2033, %v1375_v41  }
 0x669   : > { %1448 = vperm.xlu0 %2034, %v1374_v20   ;;  %v2857_v29 = vpop.permute.xlu1 %1537 }
 0x66b   : > { %2035 = vset.pattern.permute.xlu1 %v2121_v55 }
 0x66c   : > { %1545 = vperm.xlu1 %2035, %v2055_v22  }
 0x66d   : > { %2036 = vset.pattern.permute.xlu0 %v2121_v55  ;;  %v1526_v55 = vpop.permute.xlu0 %1525 }
 0x66e   : > { %1549 = vperm.xlu0 %2036, %v2056_v37  }
 0x671   : > { %v2855_v53 = vpop.permute.xlu0 %1533 }
 0x675   : > { %v2860_v21 = vpop.permute.xlu0 %1541 }
 0x6c6   : > { %v1384_v19 = vpop.permute.xlu1 %1383 }
 0x6c7   : > { %v1458_v15 = vmul.f32 %v1384_v19, %v2739_v40  ;;  %v1459_v24 = vmul.f32 %v1384_v19, %v2742_v39 }
 0x6c8   : > { %v1379_v32 = vpop.permute.xlu0 %1378 }
 0x6c9   : > { %v1554_v17 = vadd.f32 %v1494_v4, %v1458_v15  ;;  %v1555_v62 = vadd.f32 %v1494_v4, %v1459_v24  ;;  %v1456_v16 = vmul.f32 %v1379_v32, %v2763_v31  ;;  %v1457_v12 = vmul.f32 %v1379_v32, %v2766_v50 }
 0x6ca   : > { %v1414_v58 = vpop.permute.xlu1 %1413 }
 0x6cb   : > { %1586 = vst [vmem:[%s2868_s9 + $0x10] sm:$0xff] %v1554_v17  ;;  %1587 = vst [vmem:[%s2868_s9 + $0x18] sm:$0xff] %v1555_v62  ;;  %v1552_v40 = vadd.f32 %v1490_v46, %v1456_v16  ;;  %v1553_v39 = vadd.f32 %v1490_v46, %v1457_v12  ;;  %v1470_v7 = vmul.f32 %v1414_v58, %v2679_v5 }
 0x6cc   : > { %v1471_v10 = vmul.f32 %v1414_v58, %v2682_v52  ;;  %v1409_v31 = vpop.permute.xlu0 %1408 }
 0x6cd   : > { %1584 = vst [vmem:[%s2868_s9] sm:$0xff] %v1552_v40  ;;  %1585 = vst [vmem:[%s2868_s9 + $0x8] sm:$0xff] %v1553_v39  ;;  %v1566_v50 = vadd.f32 %v1518_v25, %v1470_v7  ;;  %v1468_v41 = vmul.f32 %v1409_v31, %v2709_v0  ;;  %v1469_v48 = vmul.f32 %v1409_v31, %v2712_v63 }
 0x6ce   : > { %v1567_v60 = vadd.f32 %v1518_v25, %v1471_v10  ;;  %v1394_v36 = vpop.permute.xlu1 %1393 }
 0x6cf   : > { %1598 = vst [vmem:[%s2868_s9 + $0x70] sm:$0xff] %v1566_v50  ;;  %v1564_v20 = vadd.f32 %v1514_v33, %v1468_v41  ;;  %v1565_v5 = vadd.f32 %v1514_v33, %v1469_v48  ;;  %v1462_v52 = vmul.f32 %v1394_v36, %v2719_v59  ;;  %v1463_v22 = vmul.f32 %v1394_v36, %v2722_v43 }
 0x6d0   : > { %1599 = vst [vmem:[%s2868_s9 + $0x78] sm:$0xff] %v1567_v60  ;;  %v1389_v37 = vpop.permute.xlu0 %1388 }
 0x6d1   : > { %1596 = vst [vmem:[%s2868_s9 + $0x60] sm:$0xff] %v1564_v20  ;;  %1597 = vst [vmem:[%s2868_s9 + $0x68] sm:$0xff] %v1565_v5  ;;  %v1558_v4 = vadd.f32 %v1502_v45, %v1462_v52  ;;  %v1559_v0 = vadd.f32 %v1502_v45, %v1463_v22  ;;  %v1460_v63 = vmul.f32 %v1389_v37, %v2749_v54 }
 0x6d2   : > { %v1461_v46 = vmul.f32 %v1389_v37, %v2752_v56  ;;  %v1424_v25 = vpop.permute.xlu1 %1423 }
 0x6d3   : > { %1590 = vst [vmem:[%s2868_s9 + $0x30] sm:$0xff] %v1558_v4  ;;  %1591 = vst [vmem:[%s2868_s9 + $0x38] sm:$0xff] %v1559_v0  ;;  %v1556_v33 = vadd.f32 %v1498_v38, %v1460_v63  ;;  %v1474_v43 = vmul.f32 %v1424_v25, %v2659_v9  ;;  %v1475_v19 = vmul.f32 %v1424_v25, %v2662_v14 }
 0x6d4   : > { %v1557_v59 = vadd.f32 %v1498_v38, %v1461_v46  ;;  %v1419_v15 = vpop.permute.xlu0 %1418 }
 0x6d5   : > { %1588 = vst [vmem:[%s2868_s9 + $0x20] sm:$0xff] %v1556_v33  ;;  %v1570_v45 = vadd.f32 %v1526_v55, %v1474_v43  ;;  %v1571_v54 = vadd.f32 %v1526_v55, %v1475_v19  ;;  %v1472_v56 = vmul.f32 %v1419_v15, %v2689_v26  ;;  %v1473_v24 = vmul.f32 %v1419_v15, %v2692_v13 }
 0x6d6   : > { %1589 = vst [vmem:[%s2868_s9 + $0x28] sm:$0xff] %v1557_v59  ;;  %v1404_v32 = vpop.permute.xlu1 %1403 }
 0x6d7   : > { %1602 = vst [vmem:[%s2868_s9 + $0x90] sm:$0xff] %v1570_v45  ;;  %1603 = vst [vmem:[%s2868_s9 + $0x98] sm:$0xff] %v1571_v54  ;;  %v1568_v9 = vadd.f32 %v2851_v30, %v1472_v56  ;;  %v1569_v14 = vadd.f32 %v2851_v30, %v1473_v24  ;;  %v1466_v38 = vmul.f32 %v1404_v32, %v2699_v49 }
 0x6d8   : > { %v1467_v17 = vmul.f32 %v1404_v32, %v2702_v47  ;;  %v1399_v62 = vpop.permute.xlu0 %1398 }
 0x6d9   : > { %1600 = vst [vmem:[%s2868_s9 + $0x80] sm:$0xff] %v1568_v9  ;;  %1601 = vst [vmem:[%s2868_s9 + $0x88] sm:$0xff] %v1569_v14  ;;  %v1562_v26 = vadd.f32 %v2849_v23, %v1466_v38  ;;  %v1464_v55 = vmul.f32 %v1399_v62, %v2729_v18  ;;  %v1465_v16 = vmul.f32 %v1399_v62, %v2732_v57 }
 0x6da   : > { %v1563_v13 = vadd.f32 %v2849_v23, %v1467_v17  ;;  %v1434_v12 = vpop.permute.xlu1 %1433 }
 0x6db   : > { %1594 = vst [vmem:[%s2868_s9 + $0x50] sm:$0xff] %v1562_v26  ;;  %v1560_v49 = vadd.f32 %v2847_v8, %v1464_v55  ;;  %v1561_v47 = vadd.f32 %v2847_v8, %v1465_v16  ;;  %v1478_v30 = vmul.f32 %v1434_v12, %v2639_v34  ;;  %v1479_v58 = vmul.f32 %v1434_v12, %v2642_v61 }
 0x6dc   : > { %1595 = vst [vmem:[%s2868_s9 + $0x58] sm:$0xff] %v1563_v13  ;;  %v1429_v40 = vpop.permute.xlu0 %1428 }
 0x6dd   : > { %1592 = vst [vmem:[%s2868_s9 + $0x40] sm:$0xff] %v1560_v49  ;;  %1593 = vst [vmem:[%s2868_s9 + $0x48] sm:$0xff] %v1561_v47  ;;  %v1574_v18 = vadd.f32 %v2855_v53, %v1478_v30  ;;  %v1575_v57 = vadd.f32 %v2855_v53, %v1479_v58  ;;  %v1476_v23 = vmul.f32 %v1429_v40, %v2669_v44 }
 0x6de   : > { %v1477_v39 = vmul.f32 %v1429_v40, %v2672_v3  ;;  %v1444_v7 = vpop.permute.xlu1 %1443 }
 0x6df   : > { %1606 = vst [vmem:[%s2868_s9 + $0xb0] sm:$0xff] %v1574_v18  ;;  %1607 = vst [vmem:[%s2868_s9 + $0xb8] sm:$0xff] %v1575_v57  ;;  %v1572_v34 = vadd.f32 %v2853_v51, %v1476_v23  ;;  %v1482_v8 = vmul.f32 %v1444_v7, %v2629_v27  ;;  %v1483_v10 = vmul.f32 %v1444_v7, %v2632_v28 }
 0x6e0   : > { %v1573_v61 = vadd.f32 %v2853_v51, %v1477_v39  ;;  %v1439_v53 = vpop.permute.xlu0 %1438 }
 0x6e1   : > { %1604 = vst [vmem:[%s2868_s9 + $0xa0] sm:$0xff] %v1572_v34  ;;  %v1578_v44 = vadd.f32 %v2860_v21, %v1482_v8  ;;  %v1579_v3 = vadd.f32 %v2860_v21, %v1483_v10  ;;  %v1480_v31 = vmul.f32 %v1439_v53, %v2649_v1  ;;  %v1481_v50 = vmul.f32 %v1439_v53, %v2652_v35 }
 0x6e2   : > { %1605 = vst [vmem:[%s2868_s9 + $0xa8] sm:$0xff] %v1573_v61  ;;  %v1454_v51 = vpop.permute.xlu1 %1453 }
 0x6e3   : > { %1610 = vst [vmem:[%s2868_s9 + $0xd0] sm:$0xff] %v1578_v44  ;;  %1611 = vst [vmem:[%s2868_s9 + $0xd8] sm:$0xff] %v1579_v3  ;;  %v1576_v27 = vadd.f32 %v2857_v29, %v1480_v31  ;;  %v1577_v28 = vadd.f32 %v2857_v29, %v1481_v50  ;;  %v1486_v35 = vmul.f32 %v1454_v51, %v2613_v42 }
 0x6e4   : > { %v1449_v60 = vpop.permute.xlu0 %1448  ;;  %v1487_v29 = vmul.f32 %v1454_v51, %v2616_v6 }
 0x6e5   : > { %1608 = vst [vmem:[%s2868_s9 + $0xc0] sm:$0xff] %v1576_v27  ;;  %1609 = vst [vmem:[%s2868_s9 + $0xc8] sm:$0xff] %v1577_v28  ;;  %v1484_v41 = vmul.f32 %v1449_v60, %v2619_v11  ;;  %v1485_v21 = vmul.f32 %v1449_v60, %v2622_v2 }
 0x6e7   : > { %v1546_v1 = vpop.permute.xlu1 %1545 }
 0x6e8   : > { %v1580_v48 = vadd.f32 %v1546_v1, %v1484_v41  ;;  %v1581_v36 = vadd.f32 %v1546_v1, %v1485_v21 }
 0x6e9   : > { %v1550_v20 = vpop.permute.xlu0 %1549 }
 0x6ea   : > { %1612 = vst [vmem:[%s2868_s9 + $0xe0] sm:$0xff] %v1580_v48  ;;  %1613 = vst [vmem:[%s2868_s9 + $0xe8] sm:$0xff] %v1581_v36  ;;  %v1582_v11 = vadd.f32 %v1550_v20, %v1486_v35  ;;  %v1583_v42 = vadd.f32 %v1550_v20, %v1487_v29 }
 0x6ec   : > { %1614 = vst [vmem:[%s2868_s9 + $0xf0] sm:$0xff] %v1582_v11  ;;  %1615 = vst [vmem:[%s2868_s9 + $0xf8] sm:$0xff] %v1583_v42 }
 0x6ed   : > { %2070 = shalt.err (!%p2067_p3)
}
 0x6ee   : > { %s2071_s25 = scalar_lea.hbm %s2945_s14, 4096  ;;  %s2075_s6 = scalar_lea.hbm %s3000_s5, 8192 }
 0x6ef   : > { %p2072_p4 = scmp.ne.s32.totalorder %s2945_s14, %s2071_s25  ;;  %p2076_p9 = scmp.lt.s32.totalorder %s2945_s14, %s3000_s5 }
 0x6f0   : > { %p2077_p10 = scmp.lt.s32.totalorder %s2075_s6, %s2071_s25 }
 0x6f1   : > { %p2073_p7 = pnand %p2072_p4, %p2193_p5 }
 0x6f2   : > { %p2078_p11 = por %p2077_p10, %p2076_p9 }
 0x6f3   : > { %p2074_p8 = pneg %p2073_p7 }
 0x6f5   : > { %p2079_p12 = pnand %p2078_p11, %p2074_p8 }
 0x6f7   : > { %2082 = shalt.err (!%p2079_p12)
}
 0x6f8   : > { %s2123_s9 = smov 256   ;;  %s2124_s10 = smov 16  }
 0x6f9   : > { %1985 = dma.vmem_to_hbm [thread:$0]  (%p2193_p5), %s2947_s11, 4096, %s2945_s14, %s2955_s22, %s2123_s9, %s2123_s9, %s2124_s10  }
 0x6fa PF: > { %p1991_p13 = scmp.ge.s32.totalorder %s2117_s21, 2  ;;  %s1645_s12 = sand.u32 1, %s2105_s18  }
 0x6fb   : > { %s1646_s13 = scalar_lea.sflag [#allocation3], %s1645_s12 }
 0x6fc   : > { %p1988_p0 = pnand %p1991_p13, %p2197_p6 }
 0x6fe   : > { %p1989_p1 = pneg %p1988_p0 }
 0x700   : > { %2100 = dma.done.wait (%p1989_p1), %s1646_s13, 4096  }
 0x701   : > { %2102 = vsyncadd (%p1989_p1), %s1646_s13, 4294963200  ;;  %p15_p2 = scmp.ge.s32.totalorder %s2180_s24, 4   ;;  %s3070_s18 = smov %s2109_s19 }
 0x702   : > { %s3071_s19 = smov %s2113_s20  ;;  %s3072_s20 = smov %s2191_s27 }
 0x703   : > { %s3073_s21 = smov %s2180_s24  ;;  %17 = sbr.rel (!%p15_p2) target bundleno = 3 (0x3), region = 75 }
 0x708   :  { %1651 = vsyncpa [#allocation3], 1 }
 0x709   :  { %1653 = vsyncpa [#allocation3 + $0x1], 1 }

</bundles_post_ra>
